<compile_context>
chip_gen: v7x
topology: tpu7x:2x2x1
jax: 0.10.0
libtpu: 0.0.40
codegen_flags: <defaults>
</compile_context>

<pallas_src>
import functools

import jax
import jax.numpy as jnp
from jax.experimental import pallas as pl
from jax.experimental.pallas import tpu as pltpu


def _mab_kernel(H, fold_out, x_ref, y_ref, wq_ref, wk_ref, wv_ref, wo_ref, wr_ref,
                vecs_ref, out_ref, attn_ref):
    Bc, n, d = x_ref.shape
    _, m, _ = y_ref.shape
    p = d // H

    xf = x_ref[...].reshape(Bc * n, d)          # flatten batch chunk into rows
    yf = y_ref[...].reshape(Bc * m, d)

    vecs = vecs_ref[...]                        # packed row vectors (16, d)
    bq, bk, bv, bo, br = vecs[0:1], vecs[1:2], vecs[2:3], vecs[3:4], vecs[4:5]
    g1, b1, g2, b2 = vecs[5:6], vecs[6:7], vecs[7:8], vecs[8:9]

    # Full-width input projections (one MXU-friendly matmul each).  K and V share
    # the same LHS but are separate dots: no fused-KV result to split at a
    # non-128-aligned lane boundary.
    q3 = (jnp.dot(xf, wq_ref[...], preferred_element_type=jnp.float32) + bq).reshape(Bc, n, d)
    k3 = (jnp.dot(yf, wk_ref[...], preferred_element_type=jnp.float32) + bk).reshape(Bc, m, d)
    v3 = (jnp.dot(yf, wv_ref[...], preferred_element_type=jnp.float32) + bv).reshape(Bc, m, d)

    # True per-head attention.  H is a static Python int, so this loop unrolls at
    # trace time; each head is a single-batch-dim 3-D einsum, total MXU FLOPs are
    # the real n*m*d per chunk (no H-times redundancy, no hmask/bones constants).
    o_proj = None
    for hh in range(H):
        sl = slice(hh * p, (hh + 1) * p)
        qh, kh, vh = q3[:, :, sl], k3[:, :, sl], v3[:, :, sl]     # (Bc, n|m, p)
        s = jnp.einsum('bnp,bmp->bnm', qh, kh,
                       preferred_element_type=jnp.float32)        # (Bc, n, m)
        # Per-head row max -> stable softmax matching the reference per-head softmax.
        s = s - jnp.max(s, axis=-1, keepdims=True)
        e = jnp.exp(s)
        # Exact reciprocal on purpose: the attn output is checked to ~1e-5.
        a = e * pl.reciprocal(jnp.sum(e, axis=-1, keepdims=True), approx=False)
        # This head's attention weights: static slice store into the (Bc, n, H*m)
        # output block (lane index = head*m + key).
        attn_ref[:, :, hh * m:(hh + 1) * m] = a
        # Head-concat fused into the output projection:
        #   concat_h(attn_h @ V_h) @ Wo == sum_h (attn_h @ V_h) @ Wo[h*p:(h+1)*p, :]
        ov = jnp.einsum('bnm,bmp->bnp', a, vh,
                        preferred_element_type=jnp.float32).reshape(Bc * n, p)
        contrib = jnp.dot(ov, wo_ref[hh], preferred_element_type=jnp.float32)
        o_proj = contrib if o_proj is None else o_proj + contrib
    o = o_proj + bo                                               # (Bc*n, d)

    # Residual + LayerNorm1.
    hres = xf + o
    mu = jnp.mean(hres, axis=-1, keepdims=True)
    var = jnp.mean((hres - mu) ** 2, axis=-1, keepdims=True)
    hres = (hres - mu) * jax.lax.rsqrt(var + 1e-5) * g1 + b1

    # rFF (Linear + ReLU), residual, LayerNorm2.
    r = jnp.maximum(jnp.dot(hres, wr_ref[...], preferred_element_type=jnp.float32) + br, 0.0)
    h2 = hres + r
    mu2 = jnp.mean(h2, axis=-1, keepdims=True)
    var2 = jnp.mean((h2 - mu2) ** 2, axis=-1, keepdims=True)
    out2 = ((h2 - mu2) * jax.lax.rsqrt(var2 + 1e-5) * g2 + b2).reshape(Bc, n, d)

    if fold_out:
        # Lane-dense (Bc, n*d) output slab: pack row-by-row with static slice stores
        # (same data movement as a relayout, but the HBM-side block row is a dense
        # >=128-lane slab).  n is small and static, so this unrolls cheaply.
        for i in range(n):
            out_ref[:, i * d:(i + 1) * d] = out2[:, i, :]
    else:
        out_ref[...] = out2


def _vmem_capacity_bytes():
    """Per-core VMEM capacity; conservative fallback if the query is unavailable."""
    try:
        return int(pltpu.get_tpu_info().vmem_capacity_bytes)
    except Exception:
        return 64 * 1024 * 1024   # v7x per-TensorCore VMEM (smallest current generation)


def _pick_chunk(b, n, m, d, h, budget_bytes):
    """Largest batch chunk whose per-step working set fits the VMEM budget.

    bc must equal b or be a multiple of 8 so 2-D (bc, ...) output slabs keep a
    legal (8, 128)-aligned block.  (On v7x one could additionally prefer >=2
    chunks to feed both TensorCores; at the demo batch the alignment rule forces
    a single chunk anyway.)
    """
    def step_bytes(c):
        f32 = 4
        return f32 * (
            2 * c * (n + m) * d        # x / y input blocks, double-buffered
            + 3 * c * n * d            # q + post-attention intermediates
            + 2 * c * m * d            # k, v
            + 3 * c * n * h * m        # per-head scores / exp / attn (upper bound)
            + 2 * c * n * (d + h * m)  # output blocks, double-buffered
        )

    if step_bytes(b) <= budget_bytes:
        return b
    c = (b // 8) * 8
    while c >= 8:
        if b % c == 0 and step_bytes(c) <= budget_bytes:
            return c
        c -= 8
    return b


def mab_forward(x, y, params, *, num_heads):
    """MultiheadAttentionBlock forward. x: (b, n, d), y: (b, m, d), float32."""
    b, n, d = x.shape
    _, m, _ = y.shape
    h = num_heads
    assert d % h == 0
    p = d // h

    vmem_cap = _vmem_capacity_bytes()
    bc = _pick_chunk(b, n, m, d, h, budget_bytes=int(vmem_cap * 0.6))
    grid = (b // bc,)

    # Pre-transpose PyTorch-style (out, in) weights to (in, out); split Wo by head
    # rows so the head-concat can be fused into the output projection in-kernel.
    wq = params["wq"].T
    wk = params["wk"].T
    wv = params["wv"].T
    wo_heads = params["wo"].T.reshape(h, p, d)
    wr = params["wr"].T
    zero = jnp.zeros((d,), jnp.float32)
    vecs = jnp.stack([params["bq"], params["bk"], params["bv"], params["bo"],
                      params["br"], params["ln1_g"], params["ln1_b"],
                      params["ln2_g"], params["ln2_b"]] + [zero] * 7, axis=0)   # (16, d)

    # Fold the main output into a lane-dense (bc, n*d) slab only when d alone is
    # narrower than a vreg row; at realistic model dims (d % 128 == 0) the natural
    # 3-D layout is already lane-dense and the fold is skipped.
    fold_out = (d % 128 != 0) and n <= 16

    full = lambda shape: pl.BlockSpec(shape, lambda i: tuple(0 for _ in shape))

    if fold_out:
        out_shape0 = jax.ShapeDtypeStruct((b, n * d), jnp.float32)
        out_spec0 = pl.BlockSpec((bc, n * d), lambda i: (i, 0))
    else:
        out_shape0 = jax.ShapeDtypeStruct((b, n, d), jnp.float32)
        out_spec0 = pl.BlockSpec((bc, n, d), lambda i: (i, 0, 0))

    out_raw, attn_raw = pl.pallas_call(
        functools.partial(_mab_kernel, h, fold_out),
        out_shape=(
            out_shape0,
            jax.ShapeDtypeStruct((b, n, h * m), jnp.float32),
        ),
        grid_spec=pltpu.PrefetchScalarGridSpec(
            num_scalar_prefetch=0,
            grid=grid,
            in_specs=[
                pl.BlockSpec((bc, n, d), lambda i: (i, 0, 0)),   # x, one batch chunk per step
                pl.BlockSpec((bc, m, d), lambda i: (i, 0, 0)),   # y, one batch chunk per step
                full((d, d)),        # Wq
                full((d, d)),        # Wk
                full((d, d)),        # Wv
                full((h, p, d)),     # Wo, split by head rows
                full((d, d)),        # Wr (rff)
                full((16, d)),       # packed bias / layernorm row vectors
            ],
            out_specs=[
                out_spec0,
                pl.BlockSpec((bc, n, h * m), lambda i: (i, 0, 0)),
            ],
        ),
        compiler_params=pltpu.CompilerParams(
            dimension_semantics=("parallel",),
            vmem_limit_bytes=int(vmem_cap * 0.9),
        ),
    )(x, y, wq, wk, wv, wo_heads, wr, vecs)

    out = out_raw.reshape(b, n, d) if fold_out else out_raw
    # (b, n, h, m) -> PyTorch layout (h*b, n, m) with index = head*b + batch.
    # TODO(synk): if the consumer accepts (b, n, h, m), this extra HBM pass can be dropped.
    attn = attn_raw.reshape(b, n, h, m).transpose(2, 0, 1, 3).reshape(h * b, n, m)
    return out, attn


def mab_reference(x, y, params, *, num_heads):
    """Pure-JAX reference mirroring the PyTorch module."""
    b, n, d = x.shape
    _, m, _ = y.shape
    h = num_heads
    p = d // h

    lin = lambda t, w, bias: t @ w.T + bias
    q = lin(x, params["wq"], params["bq"])
    k = lin(y, params["wk"], params["bk"])
    v = lin(y, params["wv"], params["bv"])

    def split_heads(t, nn):
        return t.reshape(b, nn, h, p).transpose(2, 0, 1, 3).reshape(h * b, nn, p)

    qh, kh, vh = split_heads(q, n), split_heads(k, m), split_heads(v, m)
    scores = jnp.einsum("bqp,bkp->bqk", qh, kh)            # sim='dot': no scaling
    attn = jax.nn.softmax(scores, axis=2)
    o = jnp.einsum("bqk,bkp->bqp", attn, vh)
    o = o.reshape(h, b, n, p).transpose(1, 2, 0, 3).reshape(b, n, d)
    o = lin(o, params["wo"], params["bo"])

    def layernorm(t, g, beta):
        mu = t.mean(-1, keepdims=True)
        var = ((t - mu) ** 2).mean(-1, keepdims=True)
        return (t - mu) * jax.lax.rsqrt(var + 1e-5) * g + beta

    hh = layernorm(x + o, params["ln1_g"], params["ln1_b"])
    r = jnp.maximum(lin(hh, params["wr"], params["br"]), 0.0)
    out = layernorm(hh + r, params["ln2_g"], params["ln2_b"])
    return out, attn


def make_params(key, d):
    ks = jax.random.split(key, 7)
    scale = 1.0 / jnp.sqrt(d)
    return {
        "wq": jax.random.normal(ks[0], (d, d), jnp.float32) * scale,
        "bq": jnp.zeros((d,), jnp.float32),
        "wk": jax.random.normal(ks[1], (d, d), jnp.float32) * scale,
        "bk": jnp.zeros((d,), jnp.float32),
        "wv": jax.random.normal(ks[2], (d, d), jnp.float32) * scale,
        "bv": jnp.zeros((d,), jnp.float32),
        "wo": jax.random.normal(ks[3], (d, d), jnp.float32) * scale,
        "bo": jnp.zeros((d,), jnp.float32),
        "wr": jax.random.normal(ks[4], (d, d), jnp.float32) * scale,
        "br": jax.random.normal(ks[5], (d,), jnp.float32) * 0.01,
        "ln1_g": jnp.ones((d,), jnp.float32),
        "ln1_b": jnp.zeros((d,), jnp.float32),
        "ln2_g": jnp.ones((d,), jnp.float32),
        "ln2_b": jnp.zeros((d,), jnp.float32),
    }


if __name__ == "__main__":
    B, N, M, D, H = 2, 4, 8, 32, 4   # batch, queries, keys, model dim, heads

    key = jax.random.PRNGKey(0)
    pkey, xkey, ykey = jax.random.split(key, 3)
    params = make_params(pkey, D)
    x = jax.random.normal(xkey, (B, N, D), jnp.float32)
    y = jax.random.normal(ykey, (B, M, D), jnp.float32)

    out, attn = mab_forward(x, y, params, num_heads=H)
    jax.block_until_ready(out)
    jax.block_until_ready(attn)

    out_ref, attn_ref = mab_reference(x, y, params, num_heads=H)
    assert out.shape == (B, N, D)
    assert attn.shape == (H * B, N, M)
    assert jnp.allclose(out, out_ref, atol=1e-4, rtol=1e-4)
    assert jnp.allclose(attn, attn_ref, atol=2e-5, rtol=2e-5)

    print("KERNEL_OK")
</pallas_src>

<mosaic_0001>
module attributes {stable_mosaic.version = 11 : i64} {
  func.func @_mab_kernel(%arg0: i32, %arg1: memref<2x4x32xf32, #tpu.memory_space<vmem>>, %arg2: memref<2x8x32xf32, #tpu.memory_space<vmem>>, %arg3: memref<32x32xf32, #tpu.memory_space<vmem>>, %arg4: memref<32x32xf32, #tpu.memory_space<vmem>>, %arg5: memref<32x32xf32, #tpu.memory_space<vmem>>, %arg6: memref<4x8x32xf32, #tpu.memory_space<vmem>>, %arg7: memref<32x32xf32, #tpu.memory_space<vmem>>, %arg8: memref<16x32xf32, #tpu.memory_space<vmem>>, %arg9: memref<2x128xf32, #tpu.memory_space<vmem>>, %arg10: memref<2x4x32xf32, #tpu.memory_space<vmem>>) attributes {dimension_semantics = [#tpu.dimension_semantics<parallel>], iteration_bounds = array<i64: 1>, scalar_prefetch = 0 : i64, scratch_operands = 0 : i64, tpu.core_type = #tpu.core_type<tc>, window_params = [{transform_indices = @transform_0, window_bounds = array<i64: 2, 4, 32>}, {transform_indices = @transform_1, window_bounds = array<i64: 2, 8, 32>}, {pipeline_mode = #tpu.pipeline_mode<synchronous>, transform_indices = @transform_2, window_bounds = array<i64: 32, 32>}, {pipeline_mode = #tpu.pipeline_mode<synchronous>, transform_indices = @transform_3, window_bounds = array<i64: 32, 32>}, {pipeline_mode = #tpu.pipeline_mode<synchronous>, transform_indices = @transform_4, window_bounds = array<i64: 32, 32>}, {pipeline_mode = #tpu.pipeline_mode<synchronous>, transform_indices = @transform_5, window_bounds = array<i64: 4, 8, 32>}, {pipeline_mode = #tpu.pipeline_mode<synchronous>, transform_indices = @transform_6, window_bounds = array<i64: 32, 32>}, {pipeline_mode = #tpu.pipeline_mode<synchronous>, transform_indices = @transform_7, window_bounds = array<i64: 16, 32>}, {transform_indices = @transform_8, window_bounds = array<i64: 2, 128>}, {transform_indices = @transform_9, window_bounds = array<i64: 2, 4, 32>}]} {
    %c0 = arith.constant 0 : index
    %c0_0 = arith.constant 0 : index
    %c0_1 = arith.constant 0 : index
    %0 = vector.load %arg1[%c0, %c0_0, %c0_1] : memref<2x4x32xf32, #tpu.memory_space<vmem>>, vector<2x4x32xf32>
    %1 = vector.shape_cast %0 : vector<2x4x32xf32> to vector<8x32xf32>
    %c0_2 = arith.constant 0 : index
    %c0_3 = arith.constant 0 : index
    %c0_4 = arith.constant 0 : index
    %2 = vector.load %arg2[%c0_2, %c0_3, %c0_4] : memref<2x8x32xf32, #tpu.memory_space<vmem>>, vector<2x8x32xf32>
    %3 = vector.shape_cast %2 : vector<2x8x32xf32> to vector<16x32xf32>
    %c0_5 = arith.constant 0 : index
    %c0_6 = arith.constant 0 : index
    %4 = vector.load %arg8[%c0_5, %c0_6] : memref<16x32xf32, #tpu.memory_space<vmem>>, vector<16x32xf32>
    %5 = vector.extract_strided_slice %4 {offsets = [0, 0], sizes = [1, 32], strides = [1, 1]} : vector<16x32xf32> to vector<1x32xf32>
    %6 = vector.extract_strided_slice %4 {offsets = [1, 0], sizes = [1, 32], strides = [1, 1]} : vector<16x32xf32> to vector<1x32xf32>
    %7 = vector.extract_strided_slice %4 {offsets = [2, 0], sizes = [1, 32], strides = [1, 1]} : vector<16x32xf32> to vector<1x32xf32>
    %8 = vector.extract_strided_slice %4 {offsets = [3, 0], sizes = [1, 32], strides = [1, 1]} : vector<16x32xf32> to vector<1x32xf32>
    %9 = vector.extract_strided_slice %4 {offsets = [4, 0], sizes = [1, 32], strides = [1, 1]} : vector<16x32xf32> to vector<1x32xf32>
    %10 = vector.extract_strided_slice %4 {offsets = [5, 0], sizes = [1, 32], strides = [1, 1]} : vector<16x32xf32> to vector<1x32xf32>
    %11 = vector.extract_strided_slice %4 {offsets = [6, 0], sizes = [1, 32], strides = [1, 1]} : vector<16x32xf32> to vector<1x32xf32>
    %12 = vector.extract_strided_slice %4 {offsets = [7, 0], sizes = [1, 32], strides = [1, 1]} : vector<16x32xf32> to vector<1x32xf32>
    %13 = vector.extract_strided_slice %4 {offsets = [8, 0], sizes = [1, 32], strides = [1, 1]} : vector<16x32xf32> to vector<1x32xf32>
    %c0_7 = arith.constant 0 : index
    %c0_8 = arith.constant 0 : index
    %14 = vector.load %arg3[%c0_7, %c0_8] : memref<32x32xf32, #tpu.memory_space<vmem>>, vector<32x32xf32>
    %cst = arith.constant dense<0.000000e+00> : vector<8x32xf32>
    %15 = tpu.matmul %1, %14, %cst {dimension_numbers = #tpu.dot_dimension_numbers<[1], [0], [0], [1], [0, 0, 1, 1], [], []>} : vector<8x32xf32>, vector<32x32xf32>, vector<8x32xf32> -> vector<8x32xf32>
    %16 = vector.broadcast %5 : vector<1x32xf32> to vector<8x32xf32>
    %17 = arith.addf %15, %16 : vector<8x32xf32>
    %18 = vector.shape_cast %17 : vector<8x32xf32> to vector<2x4x32xf32>
    %c0_9 = arith.constant 0 : index
    %c0_10 = arith.constant 0 : index
    %19 = vector.load %arg4[%c0_9, %c0_10] : memref<32x32xf32, #tpu.memory_space<vmem>>, vector<32x32xf32>
    %cst_11 = arith.constant dense<0.000000e+00> : vector<16x32xf32>
    %20 = tpu.matmul %3, %19, %cst_11 {dimension_numbers = #tpu.dot_dimension_numbers<[1], [0], [0], [1], [0, 0, 1, 1], [], []>} : vector<16x32xf32>, vector<32x32xf32>, vector<16x32xf32> -> vector<16x32xf32>
    %21 = vector.broadcast %6 : vector<1x32xf32> to vector<16x32xf32>
    %22 = arith.addf %20, %21 : vector<16x32xf32>
    %23 = vector.shape_cast %22 : vector<16x32xf32> to vector<2x8x32xf32>
    %c0_12 = arith.constant 0 : index
    %c0_13 = arith.constant 0 : index
    %24 = vector.load %arg5[%c0_12, %c0_13] : memref<32x32xf32, #tpu.memory_space<vmem>>, vector<32x32xf32>
    %cst_14 = arith.constant dense<0.000000e+00> : vector<16x32xf32>
    %25 = tpu.matmul %3, %24, %cst_14 {dimension_numbers = #tpu.dot_dimension_numbers<[1], [0], [0], [1], [0, 0, 1, 1], [], []>} : vector<16x32xf32>, vector<32x32xf32>, vector<16x32xf32> -> vector<16x32xf32>
    %26 = vector.broadcast %7 : vector<1x32xf32> to vector<16x32xf32>
    %27 = arith.addf %25, %26 : vector<16x32xf32>
    %28 = vector.shape_cast %27 : vector<16x32xf32> to vector<2x8x32xf32>
    %29 = vector.extract_strided_slice %18 {offsets = [0, 0, 0], sizes = [2, 4, 8], strides = [1, 1, 1]} : vector<2x4x32xf32> to vector<2x4x8xf32>
    %30 = vector.extract_strided_slice %23 {offsets = [0, 0, 0], sizes = [2, 8, 8], strides = [1, 1, 1]} : vector<2x8x32xf32> to vector<2x8x8xf32>
    %31 = vector.extract_strided_slice %28 {offsets = [0, 0, 0], sizes = [2, 8, 8], strides = [1, 1, 1]} : vector<2x8x32xf32> to vector<2x8x8xf32>
    "tpu.trace_start"() <{level = 10 : i32, message = "bnp,bmp->bnm"}> : () -> ()
    %cst_15 = arith.constant dense<0.000000e+00> : vector<2x4x8xf32>
    %32 = tpu.matmul %29, %30, %cst_15 {dimension_numbers = #tpu.dot_dimension_numbers<[2], [2], [1], [1], [0, 0, 0, 1, 1, 1], [0], [0]>} : vector<2x4x8xf32>, vector<2x8x8xf32>, vector<2x4x8xf32> -> vector<2x4x8xf32>
    "tpu.trace_stop"() : () -> ()
    %cst_16 = arith.constant dense<0xFF800000> : vector<2x4xf32>
    %33 = vector.multi_reduction <maximumf>, %32, %cst_16 [2] : vector<2x4x8xf32> to vector<2x4xf32>
    %34 = vector.shape_cast %33 : vector<2x4xf32> to vector<2x4x1xf32>
    %35 = vector.broadcast %34 : vector<2x4x1xf32> to vector<2x4x8xf32>
    %36 = arith.subf %32, %35 : vector<2x4x8xf32>
    %37 = math.exp %36 : vector<2x4x8xf32>
    %cst_17 = arith.constant dense<0.000000e+00> : vector<2x4xf32>
    %38 = vector.multi_reduction <add>, %37, %cst_17 [2] : vector<2x4x8xf32> to vector<2x4xf32>
    %39 = vector.shape_cast %38 : vector<2x4xf32> to vector<2x4x1xf32>
    %40 = tpu.reciprocal %39 : vector<2x4x1xf32> -> vector<2x4x1xf32>
    %41 = vector.broadcast %40 : vector<2x4x1xf32> to vector<2x4x8xf32>
    %42 = arith.mulf %37, %41 : vector<2x4x8xf32>
    %c0_18 = arith.constant 0 : index
    %c0_19 = arith.constant 0 : index
    %c0_20 = arith.constant 0 : index
    %43 = vector.load %arg10[%c0_18, %c0_19, %c0_20] : memref<2x4x32xf32, #tpu.memory_space<vmem>>, vector<2x4x8xf32>
    tpu.vector_store %arg10[%c0_18, %c0_19, %c0_20], %42 {strides = array<i32>} : memref<2x4x32xf32, #tpu.memory_space<vmem>>, vector<2x4x8xf32>,
    "tpu.trace_start"() <{level = 10 : i32, message = "bnm,bmp->bnp"}> : () -> ()
    %cst_21 = arith.constant dense<0.000000e+00> : vector<2x4x8xf32>
    %44 = tpu.matmul %42, %31, %cst_21 {dimension_numbers = #tpu.dot_dimension_numbers<[2], [1], [1], [2], [0, 0, 0, 1, 1, 2], [0], [0]>} : vector<2x4x8xf32>, vector<2x8x8xf32>, vector<2x4x8xf32> -> vector<2x4x8xf32>
    "tpu.trace_stop"() : () -> ()
    %45 = vector.shape_cast %44 : vector<2x4x8xf32> to vector<8x8xf32>
    %c0_22 = arith.constant 0 : index
    %c0_23 = arith.constant 0 : index
    %c0_24 = arith.constant 0 : index
    %46 = vector.load %arg6[%c0_22, %c0_23, %c0_24] : memref<4x8x32xf32, #tpu.memory_space<vmem>>, vector<1x8x32xf32>
    %47 = vector.shape_cast %46 : vector<1x8x32xf32> to vector<8x32xf32>
    %cst_25 = arith.constant dense<0.000000e+00> : vector<8x32xf32>
    %48 = tpu.matmul %45, %47, %cst_25 {dimension_numbers = #tpu.dot_dimension_numbers<[1], [0], [0], [1], [0, 0, 1, 1], [], []>} : vector<8x8xf32>, vector<8x32xf32>, vector<8x32xf32> -> vector<8x32xf32>
    %49 = vector.extract_strided_slice %18 {offsets = [0, 0, 8], sizes = [2, 4, 8], strides = [1, 1, 1]} : vector<2x4x32xf32> to vector<2x4x8xf32>
    %50 = vector.extract_strided_slice %23 {offsets = [0, 0, 8], sizes = [2, 8, 8], strides = [1, 1, 1]} : vector<2x8x32xf32> to vector<2x8x8xf32>
    %51 = vector.extract_strided_slice %28 {offsets = [0, 0, 8], sizes = [2, 8, 8], strides = [1, 1, 1]} : vector<2x8x32xf32> to vector<2x8x8xf32>
    "tpu.trace_start"() <{level = 10 : i32, message = "bnp,bmp->bnm"}> : () -> ()
    %cst_26 = arith.constant dense<0.000000e+00> : vector<2x4x8xf32>
    %52 = tpu.matmul %49, %50, %cst_26 {dimension_numbers = #tpu.dot_dimension_numbers<[2], [2], [1], [1], [0, 0, 0, 1, 1, 1], [0], [0]>} : vector<2x4x8xf32>, vector<2x8x8xf32>, vector<2x4x8xf32> -> vector<2x4x8xf32>
    "tpu.trace_stop"() : () -> ()
    %cst_27 = arith.constant dense<0xFF800000> : vector<2x4xf32>
    %53 = vector.multi_reduction <maximumf>, %52, %cst_27 [2] : vector<2x4x8xf32> to vector<2x4xf32>
    %54 = vector.shape_cast %53 : vector<2x4xf32> to vector<2x4x1xf32>
    %55 = vector.broadcast %54 : vector<2x4x1xf32> to vector<2x4x8xf32>
    %56 = arith.subf %52, %55 : vector<2x4x8xf32>
    %57 = math.exp %56 : vector<2x4x8xf32>
    %cst_28 = arith.constant dense<0.000000e+00> : vector<2x4xf32>
    %58 = vector.multi_reduction <add>, %57, %cst_28 [2] : vector<2x4x8xf32> to vector<2x4xf32>
    %59 = vector.shape_cast %58 : vector<2x4xf32> to vector<2x4x1xf32>
    %60 = tpu.reciprocal %59 : vector<2x4x1xf32> -> vector<2x4x1xf32>
    %61 = vector.broadcast %60 : vector<2x4x1xf32> to vector<2x4x8xf32>
    %62 = arith.mulf %57, %61 : vector<2x4x8xf32>
    %c0_29 = arith.constant 0 : index
    %c0_30 = arith.constant 0 : index
    %c8 = arith.constant 8 : index
    %63 = vector.load %arg10[%c0_29, %c0_30, %c8] : memref<2x4x32xf32, #tpu.memory_space<vmem>>, vector<2x4x8xf32>
    tpu.vector_store %arg10[%c0_29, %c0_30, %c8], %62 {strides = array<i32>} : memref<2x4x32xf32, #tpu.memory_space<vmem>>, vector<2x4x8xf32>,
    "tpu.trace_start"() <{level = 10 : i32, message = "bnm,bmp->bnp"}> : () -> ()
    %cst_31 = arith.constant dense<0.000000e+00> : vector<2x4x8xf32>
    %64 = tpu.matmul %62, %51, %cst_31 {dimension_numbers = #tpu.dot_dimension_numbers<[2], [1], [1], [2], [0, 0, 0, 1, 1, 2], [0], [0]>} : vector<2x4x8xf32>, vector<2x8x8xf32>, vector<2x4x8xf32> -> vector<2x4x8xf32>
    "tpu.trace_stop"() : () -> ()
    %65 = vector.shape_cast %64 : vector<2x4x8xf32> to vector<8x8xf32>
    %c1 = arith.constant 1 : index
    %c0_32 = arith.constant 0 : index
    %c0_33 = arith.constant 0 : index
    %66 = vector.load %arg6[%c1, %c0_32, %c0_33] : memref<4x8x32xf32, #tpu.memory_space<vmem>>, vector<1x8x32xf32>
    %67 = vector.shape_cast %66 : vector<1x8x32xf32> to vector<8x32xf32>
    %cst_34 = arith.constant dense<0.000000e+00> : vector<8x32xf32>
    %68 = tpu.matmul %65, %67, %cst_34 {dimension_numbers = #tpu.dot_dimension_numbers<[1], [0], [0], [1], [0, 0, 1, 1], [], []>} : vector<8x8xf32>, vector<8x32xf32>, vector<8x32xf32> -> vector<8x32xf32>
    %69 = arith.addf %48, %68 : vector<8x32xf32>
    %70 = vector.extract_strided_slice %18 {offsets = [0, 0, 16], sizes = [2, 4, 8], strides = [1, 1, 1]} : vector<2x4x32xf32> to vector<2x4x8xf32>
    %71 = vector.extract_strided_slice %23 {offsets = [0, 0, 16], sizes = [2, 8, 8], strides = [1, 1, 1]} : vector<2x8x32xf32> to vector<2x8x8xf32>
    %72 = vector.extract_strided_slice %28 {offsets = [0, 0, 16], sizes = [2, 8, 8], strides = [1, 1, 1]} : vector<2x8x32xf32> to vector<2x8x8xf32>
    "tpu.trace_start"() <{level = 10 : i32, message = "bnp,bmp->bnm"}> : () -> ()
    %cst_35 = arith.constant dense<0.000000e+00> : vector<2x4x8xf32>
    %73 = tpu.matmul %70, %71, %cst_35 {dimension_numbers = #tpu.dot_dimension_numbers<[2], [2], [1], [1], [0, 0, 0, 1, 1, 1], [0], [0]>} : vector<2x4x8xf32>, vector<2x8x8xf32>, vector<2x4x8xf32> -> vector<2x4x8xf32>
    "tpu.trace_stop"() : () -> ()
    %cst_36 = arith.constant dense<0xFF800000> : vector<2x4xf32>
    %74 = vector.multi_reduction <maximumf>, %73, %cst_36 [2] : vector<2x4x8xf32> to vector<2x4xf32>
    %75 = vector.shape_cast %74 : vector<2x4xf32> to vector<2x4x1xf32>
    %76 = vector.broadcast %75 : vector<2x4x1xf32> to vector<2x4x8xf32>
    %77 = arith.subf %73, %76 : vector<2x4x8xf32>
    %78 = math.exp %77 : vector<2x4x8xf32>
    %cst_37 = arith.constant dense<0.000000e+00> : vector<2x4xf32>
    %79 = vector.multi_reduction <add>, %78, %cst_37 [2] : vector<2x4x8xf32> to vector<2x4xf32>
    %80 = vector.shape_cast %79 : vector<2x4xf32> to vector<2x4x1xf32>
    %81 = tpu.reciprocal %80 : vector<2x4x1xf32> -> vector<2x4x1xf32>
    %82 = vector.broadcast %81 : vector<2x4x1xf32> to vector<2x4x8xf32>
    %83 = arith.mulf %78, %82 : vector<2x4x8xf32>
    %c0_38 = arith.constant 0 : index
    %c0_39 = arith.constant 0 : index
    %c16 = arith.constant 16 : index
    %84 = vector.load %arg10[%c0_38, %c0_39, %c16] : memref<2x4x32xf32, #tpu.memory_space<vmem>>, vector<2x4x8xf32>
    tpu.vector_store %arg10[%c0_38, %c0_39, %c16], %83 {strides = array<i32>} : memref<2x4x32xf32, #tpu.memory_space<vmem>>, vector<2x4x8xf32>,
    "tpu.trace_start"() <{level = 10 : i32, message = "bnm,bmp->bnp"}> : () -> ()
    %cst_40 = arith.constant dense<0.000000e+00> : vector<2x4x8xf32>
    %85 = tpu.matmul %83, %72, %cst_40 {dimension_numbers = #tpu.dot_dimension_numbers<[2], [1], [1], [2], [0, 0, 0, 1, 1, 2], [0], [0]>} : vector<2x4x8xf32>, vector<2x8x8xf32>, vector<2x4x8xf32> -> vector<2x4x8xf32>
    "tpu.trace_stop"() : () -> ()
    %86 = vector.shape_cast %85 : vector<2x4x8xf32> to vector<8x8xf32>
    %c2 = arith.constant 2 : index
    %c0_41 = arith.constant 0 : index
    %c0_42 = arith.constant 0 : index
    %87 = vector.load %arg6[%c2, %c0_41, %c0_42] : memref<4x8x32xf32, #tpu.memory_space<vmem>>, vector<1x8x32xf32>
    %88 = vector.shape_cast %87 : vector<1x8x32xf32> to vector<8x32xf32>
    %cst_43 = arith.constant dense<0.000000e+00> : vector<8x32xf32>
    %89 = tpu.matmul %86, %88, %cst_43 {dimension_numbers = #tpu.dot_dimension_numbers<[1], [0], [0], [1], [0, 0, 1, 1], [], []>} : vector<8x8xf32>, vector<8x32xf32>, vector<8x32xf32> -> vector<8x32xf32>
    %90 = arith.addf %69, %89 : vector<8x32xf32>
    %91 = vector.extract_strided_slice %18 {offsets = [0, 0, 24], sizes = [2, 4, 8], strides = [1, 1, 1]} : vector<2x4x32xf32> to vector<2x4x8xf32>
    %92 = vector.extract_strided_slice %23 {offsets = [0, 0, 24], sizes = [2, 8, 8], strides = [1, 1, 1]} : vector<2x8x32xf32> to vector<2x8x8xf32>
    %93 = vector.extract_strided_slice %28 {offsets = [0, 0, 24], sizes = [2, 8, 8], strides = [1, 1, 1]} : vector<2x8x32xf32> to vector<2x8x8xf32>
    "tpu.trace_start"() <{level = 10 : i32, message = "bnp,bmp->bnm"}> : () -> ()
    %cst_44 = arith.constant dense<0.000000e+00> : vector<2x4x8xf32>
    %94 = tpu.matmul %91, %92, %cst_44 {dimension_numbers = #tpu.dot_dimension_numbers<[2], [2], [1], [1], [0, 0, 0, 1, 1, 1], [0], [0]>} : vector<2x4x8xf32>, vector<2x8x8xf32>, vector<2x4x8xf32> -> vector<2x4x8xf32>
    "tpu.trace_stop"() : () -> ()
    %cst_45 = arith.constant dense<0xFF800000> : vector<2x4xf32>
    %95 = vector.multi_reduction <maximumf>, %94, %cst_45 [2] : vector<2x4x8xf32> to vector<2x4xf32>
    %96 = vector.shape_cast %95 : vector<2x4xf32> to vector<2x4x1xf32>
    %97 = vector.broadcast %96 : vector<2x4x1xf32> to vector<2x4x8xf32>
    %98 = arith.subf %94, %97 : vector<2x4x8xf32>
    %99 = math.exp %98 : vector<2x4x8xf32>
    %cst_46 = arith.constant dense<0.000000e+00> : vector<2x4xf32>
    %100 = vector.multi_reduction <add>, %99, %cst_46 [2] : vector<2x4x8xf32> to vector<2x4xf32>
    %101 = vector.shape_cast %100 : vector<2x4xf32> to vector<2x4x1xf32>
    %102 = tpu.reciprocal %101 : vector<2x4x1xf32> -> vector<2x4x1xf32>
    %103 = vector.broadcast %102 : vector<2x4x1xf32> to vector<2x4x8xf32>
    %104 = arith.mulf %99, %103 : vector<2x4x8xf32>
    %c0_47 = arith.constant 0 : index
    %c0_48 = arith.constant 0 : index
    %c24 = arith.constant 24 : index
    %105 = vector.load %arg10[%c0_47, %c0_48, %c24] : memref<2x4x32xf32, #tpu.memory_space<vmem>>, vector<2x4x8xf32>
    tpu.vector_store %arg10[%c0_47, %c0_48, %c24], %104 {strides = array<i32>} : memref<2x4x32xf32, #tpu.memory_space<vmem>>, vector<2x4x8xf32>,
    "tpu.trace_start"() <{level = 10 : i32, message = "bnm,bmp->bnp"}> : () -> ()
    %cst_49 = arith.constant dense<0.000000e+00> : vector<2x4x8xf32>
    %106 = tpu.matmul %104, %93, %cst_49 {dimension_numbers = #tpu.dot_dimension_numbers<[2], [1], [1], [2], [0, 0, 0, 1, 1, 2], [0], [0]>} : vector<2x4x8xf32>, vector<2x8x8xf32>, vector<2x4x8xf32> -> vector<2x4x8xf32>
    "tpu.trace_stop"() : () -> ()
    %107 = vector.shape_cast %106 : vector<2x4x8xf32> to vector<8x8xf32>
    %c3 = arith.constant 3 : index
    %c0_50 = arith.constant 0 : index
    %c0_51 = arith.constant 0 : index
    %108 = vector.load %arg6[%c3, %c0_50, %c0_51] : memref<4x8x32xf32, #tpu.memory_space<vmem>>, vector<1x8x32xf32>
    %109 = vector.shape_cast %108 : vector<1x8x32xf32> to vector<8x32xf32>
    %cst_52 = arith.constant dense<0.000000e+00> : vector<8x32xf32>
    %110 = tpu.matmul %107, %109, %cst_52 {dimension_numbers = #tpu.dot_dimension_numbers<[1], [0], [0], [1], [0, 0, 1, 1], [], []>} : vector<8x8xf32>, vector<8x32xf32>, vector<8x32xf32> -> vector<8x32xf32>
    %111 = arith.addf %90, %110 : vector<8x32xf32>
    %112 = vector.broadcast %8 : vector<1x32xf32> to vector<8x32xf32>
    %113 = arith.addf %111, %112 : vector<8x32xf32>
    %114 = arith.addf %1, %113 : vector<8x32xf32>
    %cst_53 = arith.constant dense<0.000000e+00> : vector<8xf32>
    %115 = vector.multi_reduction <add>, %114, %cst_53 [1] : vector<8x32xf32> to vector<8xf32>
    %116 = vector.shape_cast %115 : vector<8xf32> to vector<8x1xf32>
    %cst_54 = arith.constant 3.200000e+01 : f32
    %117 = vector.broadcast %cst_54 : f32 to vector<8x1xf32>
    %118 = arith.divf %116, %117 : vector<8x1xf32>
    %119 = vector.broadcast %118 : vector<8x1xf32> to vector<8x32xf32>
    %120 = arith.subf %114, %119 : vector<8x32xf32>
    %121 = arith.mulf %120, %120 : vector<8x32xf32>
    %cst_55 = arith.constant dense<0.000000e+00> : vector<8xf32>
    %122 = vector.multi_reduction <add>, %121, %cst_55 [1] : vector<8x32xf32> to vector<8xf32>
    %123 = vector.shape_cast %122 : vector<8xf32> to vector<8x1xf32>
    %cst_56 = arith.constant 3.200000e+01 : f32
    %124 = vector.broadcast %cst_56 : f32 to vector<8x1xf32>
    %125 = arith.divf %123, %124 : vector<8x1xf32>
    %126 = vector.broadcast %118 : vector<8x1xf32> to vector<8x32xf32>
    %127 = arith.subf %114, %126 : vector<8x32xf32>
    %cst_57 = arith.constant 9.99999974E-6 : f32
    %128 = vector.broadcast %cst_57 : f32 to vector<8x1xf32>
    %129 = arith.addf %125, %128 : vector<8x1xf32>
    %130 = math.rsqrt %129 : vector<8x1xf32>
    %131 = vector.broadcast %130 : vector<8x1xf32> to vector<8x32xf32>
    %132 = arith.mulf %127, %131 : vector<8x32xf32>
    %133 = vector.broadcast %10 : vector<1x32xf32> to vector<8x32xf32>
    %134 = arith.mulf %132, %133 : vector<8x32xf32>
    %135 = vector.broadcast %11 : vector<1x32xf32> to vector<8x32xf32>
    %136 = arith.addf %134, %135 : vector<8x32xf32>
    %c0_58 = arith.constant 0 : index
    %c0_59 = arith.constant 0 : index
    %137 = vector.load %arg7[%c0_58, %c0_59] : memref<32x32xf32, #tpu.memory_space<vmem>>, vector<32x32xf32>
    %cst_60 = arith.constant dense<0.000000e+00> : vector<8x32xf32>
    %138 = tpu.matmul %136, %137, %cst_60 {dimension_numbers = #tpu.dot_dimension_numbers<[1], [0], [0], [1], [0, 0, 1, 1], [], []>} : vector<8x32xf32>, vector<32x32xf32>, vector<8x32xf32> -> vector<8x32xf32>
    %139 = vector.broadcast %9 : vector<1x32xf32> to vector<8x32xf32>
    %140 = arith.addf %138, %139 : vector<8x32xf32>
    %cst_61 = arith.constant 0.000000e+00 : f32
    %141 = vector.broadcast %cst_61 : f32 to vector<8x32xf32>
    %142 = arith.maximumf %140, %141 : vector<8x32xf32>
    %143 = arith.addf %136, %142 : vector<8x32xf32>
    %cst_62 = arith.constant dense<0.000000e+00> : vector<8xf32>
    %144 = vector.multi_reduction <add>, %143, %cst_62 [1] : vector<8x32xf32> to vector<8xf32>
    %145 = vector.shape_cast %144 : vector<8xf32> to vector<8x1xf32>
    %cst_63 = arith.constant 3.200000e+01 : f32
    %146 = vector.broadcast %cst_63 : f32 to vector<8x1xf32>
    %147 = arith.divf %145, %146 : vector<8x1xf32>
    %148 = vector.broadcast %147 : vector<8x1xf32> to vector<8x32xf32>
    %149 = arith.subf %143, %148 : vector<8x32xf32>
    %150 = arith.mulf %149, %149 : vector<8x32xf32>
    %cst_64 = arith.constant dense<0.000000e+00> : vector<8xf32>
    %151 = vector.multi_reduction <add>, %150, %cst_64 [1] : vector<8x32xf32> to vector<8xf32>
    %152 = vector.shape_cast %151 : vector<8xf32> to vector<8x1xf32>
    %cst_65 = arith.constant 3.200000e+01 : f32
    %153 = vector.broadcast %cst_65 : f32 to vector<8x1xf32>
    %154 = arith.divf %152, %153 : vector<8x1xf32>
    %155 = vector.broadcast %147 : vector<8x1xf32> to vector<8x32xf32>
    %156 = arith.subf %143, %155 : vector<8x32xf32>
    %cst_66 = arith.constant 9.99999974E-6 : f32
    %157 = vector.broadcast %cst_66 : f32 to vector<8x1xf32>
    %158 = arith.addf %154, %157 : vector<8x1xf32>
    %159 = math.rsqrt %158 : vector<8x1xf32>
    %160 = vector.broadcast %159 : vector<8x1xf32> to vector<8x32xf32>
    %161 = arith.mulf %156, %160 : vector<8x32xf32>
    %162 = vector.broadcast %12 : vector<1x32xf32> to vector<8x32xf32>
    %163 = arith.mulf %161, %162 : vector<8x32xf32>
    %164 = vector.broadcast %13 : vector<1x32xf32> to vector<8x32xf32>
    %165 = arith.addf %163, %164 : vector<8x32xf32>
    %166 = vector.shape_cast %165 : vector<8x32xf32> to vector<2x4x32xf32>
    %167 = vector.extract_strided_slice %166 {offsets = [0, 0, 0], sizes = [2, 1, 32], strides = [1, 1, 1]} : vector<2x4x32xf32> to vector<2x1x32xf32>
    %168 = vector.shape_cast %167 : vector<2x1x32xf32> to vector<2x32xf32>
    %c0_67 = arith.constant 0 : index
    %c0_68 = arith.constant 0 : index
    %169 = vector.load %arg9[%c0_67, %c0_68] : memref<2x128xf32, #tpu.memory_space<vmem>>, vector<2x32xf32>
    tpu.vector_store %arg9[%c0_67, %c0_68], %168 {strides = array<i32>} : memref<2x128xf32, #tpu.memory_space<vmem>>, vector<2x32xf32>,
    %170 = vector.extract_strided_slice %166 {offsets = [0, 1, 0], sizes = [2, 1, 32], strides = [1, 1, 1]} : vector<2x4x32xf32> to vector<2x1x32xf32>
    %171 = vector.shape_cast %170 : vector<2x1x32xf32> to vector<2x32xf32>
    %c0_69 = arith.constant 0 : index
    %c32 = arith.constant 32 : index
    %172 = vector.load %arg9[%c0_69, %c32] : memref<2x128xf32, #tpu.memory_space<vmem>>, vector<2x32xf32>
    tpu.vector_store %arg9[%c0_69, %c32], %171 {strides = array<i32>} : memref<2x128xf32, #tpu.memory_space<vmem>>, vector<2x32xf32>,
    %173 = vector.extract_strided_slice %166 {offsets = [0, 2, 0], sizes = [2, 1, 32], strides = [1, 1, 1]} : vector<2x4x32xf32> to vector<2x1x32xf32>
    %174 = vector.shape_cast %173 : vector<2x1x32xf32> to vector<2x32xf32>
    %c0_70 = arith.constant 0 : index
    %c64 = arith.constant 64 : index
    %175 = vector.load %arg9[%c0_70, %c64] : memref<2x128xf32, #tpu.memory_space<vmem>>, vector<2x32xf32>
    tpu.vector_store %arg9[%c0_70, %c64], %174 {strides = array<i32>} : memref<2x128xf32, #tpu.memory_space<vmem>>, vector<2x32xf32>,
    %176 = vector.extract_strided_slice %166 {offsets = [0, 3, 0], sizes = [2, 1, 32], strides = [1, 1, 1]} : vector<2x4x32xf32> to vector<2x1x32xf32>
    %177 = vector.shape_cast %176 : vector<2x1x32xf32> to vector<2x32xf32>
    %c0_71 = arith.constant 0 : index
    %c96 = arith.constant 96 : index
    %178 = vector.load %arg9[%c0_71, %c96] : memref<2x128xf32, #tpu.memory_space<vmem>>, vector<2x32xf32>
    tpu.vector_store %arg9[%c0_71, %c96], %177 {strides = array<i32>} : memref<2x128xf32, #tpu.memory_space<vmem>>, vector<2x32xf32>,
    return
  }
  func.func @transform_0(%arg0: i32) -> (i32, i32, i32) {
    %c0_i32 = arith.constant 0 : i32
    %c0_i32_0 = arith.constant 0 : i32
    %c0_i32_1 = arith.constant 0 : i32
    return %arg0, %c0_i32, %c0_i32_0 : i32, i32, i32
  }
  func.func @transform_1(%arg0: i32) -> (i32, i32, i32) {
    %c0_i32 = arith.constant 0 : i32
    %c0_i32_0 = arith.constant 0 : i32
    %c0_i32_1 = arith.constant 0 : i32
    return %arg0, %c0_i32, %c0_i32_0 : i32, i32, i32
  }
  func.func @transform_2(%arg0: i32) -> (i32, i32) {
    %c0_i32 = arith.constant 0 : i32
    %c0_i32_0 = arith.constant 0 : i32
    %c0_i32_1 = arith.constant 0 : i32
    return %c0_i32, %c0_i32_0 : i32, i32
  }
  func.func @transform_3(%arg0: i32) -> (i32, i32) {
    %c0_i32 = arith.constant 0 : i32
    %c0_i32_0 = arith.constant 0 : i32
    %c0_i32_1 = arith.constant 0 : i32
    return %c0_i32, %c0_i32_0 : i32, i32
  }
  func.func @transform_4(%arg0: i32) -> (i32, i32) {
    %c0_i32 = arith.constant 0 : i32
    %c0_i32_0 = arith.constant 0 : i32
    %c0_i32_1 = arith.constant 0 : i32
    return %c0_i32, %c0_i32_0 : i32, i32
  }
  func.func @transform_5(%arg0: i32) -> (i32, i32, i32) {
    %c0_i32 = arith.constant 0 : i32
    %c0_i32_0 = arith.constant 0 : i32
    %c0_i32_1 = arith.constant 0 : i32
    %c0_i32_2 = arith.constant 0 : i32
    return %c0_i32, %c0_i32_0, %c0_i32_1 : i32, i32, i32
  }
  func.func @transform_6(%arg0: i32) -> (i32, i32) {
    %c0_i32 = arith.constant 0 : i32
    %c0_i32_0 = arith.constant 0 : i32
    %c0_i32_1 = arith.constant 0 : i32
    return %c0_i32, %c0_i32_0 : i32, i32
  }
  func.func @transform_7(%arg0: i32) -> (i32, i32) {
    %c0_i32 = arith.constant 0 : i32
    %c0_i32_0 = arith.constant 0 : i32
    %c0_i32_1 = arith.constant 0 : i32
    return %c0_i32, %c0_i32_0 : i32, i32
  }
  func.func @transform_8(%arg0: i32) -> (i32, i32) {
    %c0_i32 = arith.constant 0 : i32
    %c0_i32_0 = arith.constant 0 : i32
    return %arg0, %c0_i32 : i32, i32
  }
  func.func @transform_9(%arg0: i32) -> (i32, i32, i32) {
    %c0_i32 = arith.constant 0 : i32
    %c0_i32_0 = arith.constant 0 : i32
    %c0_i32_1 = arith.constant 0 : i32
    return %arg0, %c0_i32, %c0_i32_0 : i32, i32, i32
  }
}

</mosaic_0001>

<bundles_post_ra>
// kernel: tpu_custom_call.1
= control target key start
LH: loop header
LB: loop body
LE: loop exit
PB: predicated region body
PF: predicated region fallthrough
CT: control target
= control target key end

     0   :  { %15 = vsyncpa [#allocation3], 0  ;;  %s3435_s0 = inlined_call_operand.hbm [shape: f32[2,4,32], index: 0, kind: input, shape index: {}]   ;;  %s3436_s1 = inlined_call_operand.hbm [shape: f32[2,8,32], index: 1, kind: input, shape index: {}]   ;;  %s3437_s2 = inlined_call_operand.hbm [shape: f32[32,32], index: 2, kind: input, shape index: {}]   ;;  %s3438_s3 = inlined_call_operand.hbm [shape: f32[32,32], index: 3, kind: input, shape index: {}]   ;;  %s3439_s4 = inlined_call_operand.hbm [shape: f32[32,32], index: 4, kind: input, shape index: {}]   ;;  %s3440_s5 = inlined_call_operand.hbm [shape: f32[4,8,32], index: 5, kind: input, shape index: {}]   ;;  %s3441_s6 = inlined_call_operand.hbm [shape: f32[32,32], index: 6, kind: input, shape index: {}]   ;;  %s3442_s7 = inlined_call_operand.vmem [shape: f32[16,32], index: 7, kind: input, shape index: {}]   ;;  %s3443_s8 = inlined_call_operand.hbm [shape: f32[2,128], index: 8, kind: output, shape index: {0}]   ;;  %s3444_s9 = inlined_call_operand.hbm [shape: f32[2,4,32], index: 9, kind: output, shape index: {1}]  }
   0x1   :  { %16 = vsyncpa [#allocation6], 0 }
   0x2   :  { %17 = vsyncpa [#allocation9], 0 }
   0x3   :  { %18 = vsyncpa [#allocation12], 0 }
   0x4   :  { %19 = vsyncpa [#allocation4], 0 }
   0x5   :  { %20 = vsyncpa [#allocation16], 0  ;;  %s2928_s30 = smov [#allocation5]   ;;  %s2718_s13 = scalar_lea.hbm %s3436_s1, 256 }
   0x6   :  { %s38_s10 = sshll.u32 %s2928_s30, 4  ;;  %p2719_p0 = scmp.ne.s32.totalorder %s3436_s1, %s2718_s13  ;;  %s39_s10 = int_to_ptr.vmem [resolvable:$true] %s38_s10 }
   0x7   :  { %p2722_p1 = scmp.lt.u32.totalorder %s2718_s13, %s3436_s1 }
   0x9   :  { %p2724_p2 = pnand %p2722_p1, %p2719_p0 }
   0xb   :  { %2727 = shalt.err (!%p2724_p2)
}
   0xc   :  { %s2728_s18 = scalar_lea.vmem %s39_s10, 256  ;;  %p2733_p4 = scmp.lt.s32.totalorder %s39_s10, %s39_s10 }
   0xd   :  { %p2729_p3 = scmp.ne.s32.totalorder %s39_s10, %s2728_s18  ;;  %p2734_p5 = scmp.lt.s32.totalorder %s2728_s18, %s2728_s18 }
   0xf   :  { %p2735_p6 = por %p2734_p5, %p2733_p4 }
  0x11   :  { %p2736_p7 = pnand %p2735_p6, %p2729_p3 }
  0x13   :  { %2739 = shalt.err (!%p2736_p7)
}
  0x14   :  { %s2929_s19 = smov 128   ;;  %s2930_s20 = smov 8  }
  0x15   :  { %44 = dma.hbm_to_vmem [thread:$0]  %s3436_s1, 256, %s39_s10, [#allocation6], %s2929_s19, %s2929_s19, %s2930_s20  }
  0x16   :  { %s2931_s23 = smov [#allocation8]   ;;  %s2932_s25 = smov [#allocation11]  }
  0x17   :  { %s62_s24 = sshll.u32 %s2931_s23, 4  ;;  %s86_s26 = sshll.u32 %s2932_s25, 4  ;;  %s63_s24 = int_to_ptr.vmem [resolvable:$true] %s62_s24  ;;  %s87_s26 = int_to_ptr.vmem [resolvable:$true] %s86_s26 }
  0x18   :  { %s2740_s29 = scalar_lea.hbm %s3438_s3, 512 }
  0x19   :  { %p2741_p8 = scmp.ne.s32.totalorder %s3438_s3, %s2740_s29  ;;  %p2744_p9 = scmp.lt.u32.totalorder %s2740_s29, %s3438_s3 }
  0x1b   :  { %p2746_p10 = pnand %p2744_p9, %p2741_p8 }
  0x1d   :  { %2749 = shalt.err (!%p2746_p10)
}
  0x1e   :  { %s2750_s1 = scalar_lea.vmem %s63_s24, 512  ;;  %p2755_p12 = scmp.lt.s32.totalorder %s63_s24, %s63_s24 }
  0x1f   :  { %p2751_p11 = scmp.ne.s32.totalorder %s63_s24, %s2750_s1  ;;  %p2756_p13 = scmp.lt.s32.totalorder %s2750_s1, %s2750_s1 }
  0x21   :  { %p2757_p0 = por %p2756_p13, %p2755_p12 }
  0x23   :  { %p2758_p1 = pnand %p2757_p0, %p2751_p11 }
  0x25   :  { %2761 = shalt.err (!%p2758_p1)
}
  0x26   :  { %68 = dma.hbm_to_vmem [thread:$0]  %s3438_s3, 512, %s63_s24, [#allocation9], %s2929_s19, %s2929_s19, %s2930_s20  }
  0x27   :  { %s2762_s17 = scalar_lea.hbm %s3440_s5, 512 }
  0x28   :  { %p2763_p2 = scmp.ne.s32.totalorder %s3440_s5, %s2762_s17  ;;  %p2766_p3 = scmp.lt.u32.totalorder %s2762_s17, %s3440_s5 }
  0x2a   :  { %p2768_p4 = pnand %p2766_p3, %p2763_p2 }
  0x2c   :  { %2771 = shalt.err (!%p2768_p4)
}
  0x2d   :  { %s2772_s25 = scalar_lea.vmem %s87_s26, 512  ;;  %p2777_p6 = scmp.lt.s32.totalorder %s87_s26, %s87_s26 }
  0x2e   :  { %p2773_p5 = scmp.ne.s32.totalorder %s87_s26, %s2772_s25  ;;  %p2778_p7 = scmp.lt.s32.totalorder %s2772_s25, %s2772_s25 }
  0x30   :  { %p2779_p8 = por %p2778_p7, %p2777_p6 }
  0x32   :  { %p2780_p9 = pnand %p2779_p8, %p2773_p5 }
  0x34   :  { %2783 = shalt.err (!%p2780_p9)
}
  0x35   :  { %92 = dma.hbm_to_vmem [thread:$0]  %s3440_s5, 512, %s87_s26, [#allocation12], %s2929_s19, %s2929_s19, %s2930_s20  }
  0x36   :  { %s2933_s27 = smov [#allocation2]   ;;  %s2784_s11 = scalar_lea.hbm %s3435_s0, 128 }
  0x37   :  { %s26_s28 = sshll.u32 %s2933_s27, 4  ;;  %p2785_p10 = scmp.ne.s32.totalorder %s3435_s0, %s2784_s11  ;;  %s27_s28 = int_to_ptr.vmem [resolvable:$true] %s26_s28 }
  0x38   :  { %p2788_p11 = scmp.lt.u32.totalorder %s2784_s11, %s3435_s0 }
  0x3a   :  { %p2790_p12 = pnand %p2788_p11, %p2785_p10 }
  0x3c   :  { %2793 = shalt.err (!%p2790_p12)
}
  0x3d   :  { %s2794_s14 = scalar_lea.vmem %s27_s28, 128  ;;  %p2799_p0 = scmp.lt.s32.totalorder %s27_s28, %s27_s28 }
  0x3e   :  { %p2795_p13 = scmp.ne.s32.totalorder %s27_s28, %s2794_s14  ;;  %p2800_p1 = scmp.lt.s32.totalorder %s2794_s14, %s2794_s14 }
  0x40   :  { %p2801_p2 = por %p2800_p1, %p2799_p0 }
  0x42   :  { %p2802_p3 = pnand %p2801_p2, %p2795_p13 }
  0x44   :  { %2805 = shalt.err (!%p2802_p3)
}
  0x45   :  { %s2934_s5 = smov 64   ;;  %s2935_s26 = smov 4  }
  0x46   :  { %32 = dma.hbm_to_vmem [thread:$0]  %s3435_s0, 128, %s27_s28, [#allocation3], %s2934_s5, %s2934_s5, %s2935_s26  }
  0x47   :  { %s2936_s17 = smov [#allocation7]   ;;  %s2937_s21 = smov [#allocation10]  }
  0x48   :  { %s50_s18 = sshll.u32 %s2936_s17, 4  ;;  %s74_s22 = sshll.u32 %s2937_s21, 4  ;;  %s51_s18 = int_to_ptr.vmem [resolvable:$true] %s50_s18  ;;  %s3063_s22 = int_to_ptr.vmem [resolvable:$true] %s74_s22 }
  0x49   :  { %s2806_s3 = scalar_lea.hbm %s3437_s2, 512 }
  0x4a   :  { %p2807_p4 = scmp.ne.s32.totalorder %s3437_s2, %s2806_s3  ;;  %p2810_p5 = scmp.lt.u32.totalorder %s2806_s3, %s3437_s2 }
  0x4c   :  { %p2812_p6 = pnand %p2810_p5, %p2807_p4 }
  0x4e   :  { %2815 = shalt.err (!%p2812_p6)
}
  0x4f   :  { %s2816_s0 = scalar_lea.vmem %s51_s18, 512  ;;  %p2821_p8 = scmp.lt.s32.totalorder %s51_s18, %s51_s18 }
  0x50   :  { %p2817_p7 = scmp.ne.s32.totalorder %s51_s18, %s2816_s0  ;;  %p2822_p9 = scmp.lt.s32.totalorder %s2816_s0, %s2816_s0 }
  0x52   :  { %p2823_p10 = por %p2822_p9, %p2821_p8 }
  0x54   :  { %p2824_p11 = pnand %p2823_p10, %p2817_p7 }
  0x56   :  { %2827 = shalt.err (!%p2824_p11)
}
  0x57   :  { %56 = dma.hbm_to_vmem [thread:$0]  %s3437_s2, 512, %s51_s18, [#allocation6], %s2929_s19, %s2929_s19, %s2930_s20  }
  0x58   :  { %s2828_s1 = scalar_lea.hbm %s3439_s4, 512 }
  0x59   :  { %p2829_p12 = scmp.ne.s32.totalorder %s3439_s4, %s2828_s1  ;;  %p2832_p13 = scmp.lt.u32.totalorder %s2828_s1, %s3439_s4 }
  0x5b   :  { %p2834_p0 = pnand %p2832_p13, %p2829_p12 }
  0x5d   :  { %2837 = shalt.err (!%p2834_p0)
}
  0x5e   :  { %s2838_s17 = scalar_lea.vmem %s3063_s22, 512  ;;  %p2843_p2 = scmp.lt.s32.totalorder %s3063_s22, %s3063_s22 }
  0x5f   :  { %p2839_p1 = scmp.ne.s32.totalorder %s3063_s22, %s2838_s17  ;;  %p2844_p3 = scmp.lt.s32.totalorder %s2838_s17, %s2838_s17 }
  0x61   :  { %p2845_p4 = por %p2844_p3, %p2843_p2 }
  0x63   :  { %p2846_p5 = pnand %p2845_p4, %p2839_p1 }
  0x65   :  { %2849 = shalt.err (!%p2846_p5)
}
  0x66   :  { %80 = dma.hbm_to_vmem [thread:$0]  %s3439_s4, 512, %s3063_s22, [#allocation9], %s2929_s19, %s2929_s19, %s2930_s20  }
  0x67   :  { %s2938_s21 = smov [#allocation13]   ;;  %s2850_s24 = scalar_lea.hbm %s3441_s6, 512 }
  0x68   :  { %s98_s23 = sshll.u32 %s2938_s21, 4  ;;  %p2851_p6 = scmp.ne.s32.totalorder %s3441_s6, %s2850_s24  ;;  %s99_s23 = int_to_ptr.vmem [resolvable:$true] %s98_s23 }
  0x69   :  { %p2854_p7 = scmp.lt.u32.totalorder %s2850_s24, %s3441_s6 }
  0x6b   :  { %p2856_p8 = pnand %p2854_p7, %p2851_p6 }
  0x6d   :  { %2859 = shalt.err (!%p2856_p8)
}
  0x6e   :  { %s2860_s28 = scalar_lea.vmem %s99_s23, 512  ;;  %p2865_p10 = scmp.lt.s32.totalorder %s99_s23, %s99_s23 }
  0x6f   :  { %p2861_p9 = scmp.ne.s32.totalorder %s99_s23, %s2860_s28  ;;  %p2866_p11 = scmp.lt.s32.totalorder %s2860_s28, %s2860_s28 }
  0x71   :  { %p2867_p12 = por %p2866_p11, %p2865_p10 }
  0x73   :  { %p2868_p13 = pnand %p2867_p12, %p2861_p9 }
  0x75   :  { %2871 = shalt.err (!%p2868_p13)
}
  0x76   :  { %104 = dma.hbm_to_vmem [thread:$0]  %s3441_s6, 512, %s99_s23, [#allocation12], %s2929_s19, %s2929_s19, %s2930_s20  }
  0x77   :  { %2916 = dma.done.wait [#allocation3], 128  }
  0x78   :  { %2917 = vsyncadd [#allocation3], 4294967168 }
  0x79   :  { %2918 = dma.done.wait [#allocation6], 768  }
  0x7a   :  { %2919 = vsyncadd [#allocation6], 4294966528 }
  0x7b   :  { %2920 = dma.done.wait [#allocation9], 1024  }
  0x7c   :  { %2921 = vsyncadd [#allocation9], 4294966272 }
  0x7d   :  { %2922 = dma.done.wait [#allocation12], 1024  }
  0x7e   :  { %2923 = vsyncadd [#allocation12], 4294966272  ;;  %v2939_v0 = vmov 0.0|0.0   ;;  %vm2940_vm0 = vmmov 0   ;;  %v2941_v1 = vmov 0.0   ;;  %v220_v2 = vld [vmem:[#allocation8] sm:$0xff]  ;;  %v138_v19 = vlaneseq }
  0x7f   :  { %2628 = vmatprep.subr.bf16.mxu0 %v2939_v0  ;;  %2492 = vmatprep.mubr.msk.f32.mxu0 %vm2940_vm0, %v2941_v1  ;;  %v221_v3 = vld [vmem:[#allocation8 + $0x8] sm:$0xff]  ;;  %v134_v4 = vld [vmem:[#allocation7] sm:$0xff]  ;;  %vm145_vm1 = vcmask 261120   ;;  %v222_v7 = vld [vmem:[#allocation8 + $0x10] sm:$0xff]  ;;  %vm392_vm2 = vcmask 64512   ;;  %s2942_s11 = smov 120  }
  0x80   :  { %v2634_v5 = vpack.c.bf16 %v221_v3, %v220_v2  ;;  %v135_v6 = vld [vmem:[#allocation7 + $0x8] sm:$0xff]  ;;  %v223_v8 = vld [vmem:[#allocation8 + $0x18] sm:$0xff]  ;;  %v130_v11 = vld [vmem:[#allocation5] sm:$0xff]  ;;  %v3132_v20 = vshrl.u32 %v138_v19, 7  ;;  %vm543_vm3 = vcmask 60416   ;;  %s2943_s12 = smov 112  }
  0x81   :  { %v2629_v9 = vpack.c.bf16 %v135_v6, %v134_v4  ;;  %v2638_v10 = vpack.c.bf16 %v223_v8, %v222_v7  ;;  %v136_v12 = vld [vmem:[#allocation7 + $0x10] sm:$0xff]  ;;  %v137_v13 = vld [vmem:[#allocation7 + $0x18] sm:$0xff]  ;;  %2503 = vmatprep.mubr.msk.f32.mxu1 %vm145_vm1, %v130_v11  ;;  %v3119_v15 = vld [vmem:[#allocation2] sm:$0xf]  ;;  %s2944_s13 = smov 104   ;;  %s2947_s1 = smov 16  }
  0x82   :  { %2635 = vmatprep.subr.bf16.mxu1 %v2634_v5  ;;  %v2632_v14 = vpack.c.bf16 %v137_v13, %v136_v12  ;;  %v3121_v16 = vld [vmem:[#allocation2 + $0x4] sm:$0xf]  ;;  %v131_v18 = vld [vmem:[#allocation5 + $0x8] sm:$0xff]  ;;  %v3135_v21 = vsub.s32 1, %v3132_v20  ;;  %v3143_v23 = vsub.s32 0, %v3132_v20  ;;  %v309_v34 = vld [vmem:[#allocation10] sm:$0xff] }
  0x83   :  { %2637 = vmatpush3.bf16.msra.mxu1 %v2634_v5  ;;  %2630 = vmatpush3.bf16.msra.mxu0 %v2629_v9  ;;  %v144_v17 = vcombine.low %v3119_v15, %v3121_v16  ;;  %v3140_v22 = vld [vmem:[%s3442_s7] sm:$0xff]  ;;  %v310_v35 = vld [vmem:[#allocation10 + $0x8] sm:$0xff]  ;;  %v311_v36 = vld [vmem:[#allocation10 + $0x10] sm:$0xff]  ;;  %v3193_v59 = vsub.s32 2, %v3132_v20  ;;  %s2948_s10 = smov 24   ;;  %vm901_vm4 = vcmask 126016  }
  0x84   :  { %2639 = vmatprep.subr.bf16.mxu1 %v2638_v10  ;;  %2631 = vmatprep.subr.bf16.mxu0 %v2939_v0  ;;  %v227_v24 = vrot.slane %v3140_v22, %v3135_v21  ;;  %v141_v25 = vrot.slane %v3140_v22, %v3143_v23  ;;  %v2642_v37 = vpack.c.bf16 %v310_v35, %v309_v34  ;;  %v312_v38 = vld [vmem:[#allocation10 + $0x18] sm:$0xff]  ;;  %vm1394_vm5 = vcmask 191616   ;;  %s2950_s15 = smov 32   ;;  %s2951_s16 = smov [#allocation14]  }
  0x85   :  { %v2646_v39 = vpack.c.bf16 %v312_v38, %v311_v36  ;;  %v316_v60 = vrot.slane %v3140_v22, %v3193_v59  ;;  %vm1811_vm6 = vcmask 257216   ;;  %vm2347_vm7 = vcmask 1044484   ;;  %s2360_s17 = sshll.u32 %s2951_s16, 4  ;;  %s2952_s2 = smov [#allocation15]   ;;  %s2361_s17 = int_to_ptr.vmem [resolvable:$true] %s2360_s17 }
  0x86   :  { %vm2317_vm8 = vcmask 1042434   ;;  %vm2304_vm9 = vcmask 1041409   ;;  %vm2307_vm10 = vcmask 254976   ;;  %vm2332_vm11 = vcmask 1043459   ;;  %s2369_s18 = sshll.u32 %s2952_s2, 4  ;;  %s2872_s21 = scalar_lea.vmem %s2361_s17, 32  ;;  %s3400_s18 = int_to_ptr.vmem [resolvable:$true] %s2369_s18 }
  0x87   :  { %2641 = vmatpush3.bf16.msra.mxu1 %v2638_v10  ;;  %2633 = vmatpush3.bf16.msra.mxu0 %v2632_v14  ;;  %vm2322_vm12 = vcmask 518401   ;;  %vm2337_vm13 = vcmask 781826   ;;  %vm2352_vm14 = vcmask 1045251   ;;  %p2873_p0 = scmp.ne.s32.totalorder %s2361_s17, %s2872_s21  ;;  %p2877_p1 = scmp.lt.s32.totalorder %s2361_s17, %s2361_s17 }
  0x88   :  { %2517 = vmatprep.subr.mxu1 %v2941_v1  ;;  %2643 = vmatprep.subr.bf16.mxu0 %v2642_v37  ;;  %p2878_p2 = scmp.lt.s32.totalorder %s2872_s21, %s2872_s21 }
  0x8a   :  { %2504 = vmatmul.mubr.msk.f32.vlgmr.msra.gmra.mrb[0].mxu1 %vm145_vm1, %v131_v18  ;;  %2493 = vmatmul.mubr.msk.f32.vlgmr.msra.gmra.mrb[0].mxu0 %vm145_vm1, %v144_v17  ;;  %p2879_p3 = por %p2878_p2, %p2877_p1 }
  0x8b   :  { %2519 = vmatprep.mubr.msk.f32.mxu1 %vm2940_vm0, %v2941_v1  ;;  %2514 = vmatprep.mubr.msk.f32.mxu0 %vm145_vm1, %v130_v11 }
  0x8c   :  { %2645 = vmatpush3.bf16.msra.mxu0 %v2642_v37  ;;  %p2880_p4 = pnand %p2879_p3, %p2873_p0 }
  0x8d   :  { %2647 = vmatprep.subr.bf16.mxu0 %v2646_v39 }
  0x90   :  { %2649 = vmatpush3.bf16.msra.mxu0 %v2646_v39 }
  0x91   :  { %2537 = vmatprep.subr.mxu0 %v2941_v1 }
  0x93   :  { %2515 = vmatmul.mubr.msk.f32.vlgmr.msra.gmra.mrb[2].mxu0 %vm145_vm1, %v131_v18 }
  0x94   :  { %2539 = vmatprep.mubr.msk.f32.mxu0 %vm2940_vm0, %v2941_v1 }
 0x15d   :  { %v2505_v26 = vpop.f32.mrb[0].mxu1  ;;  %v214_v27 = vpop.f32.mrb[0].mxu0 }
 0x15e   :  { %v3149_v28 = vadd.f32 %v2505_v26, %v227_v24  ;;  %v300_v29 = vpop.f32.mrb[1].mxu1  ;;  %v2494_v30 = vpop.f32.mrb[1].mxu0  ;;  %v3155_v32 = vadd.f32 %v214_v27, %v141_v25 }
 0x15f   :  { %v3151_v31 = vadd.f32 %v300_v29, %v227_v24 }
 0x160   :  { %795 = vrot.lane.b32.xlu1 %v3149_v28, %s2942_s11  ;;  %v3170_v33 = vcombine.high %v3155_v32, %v3155_v32 }
 0x161   :  { %2518 = vmatpush3.xpose.msk.msra.mxu1 %vm392_vm2, %v3151_v31 }
 0x162   :  { %2522 = vmatprep.subr.mxu1 %v2941_v1 }
 0x164   :  { %715 = vrot.lane.b32.xlu1 %v3155_v32, %s2942_s11  ;;  %2520 = vmatmul.mubr.msk.f32.vlgmr.msra.gmra.mrb[2].mxu1 %vm392_vm2, %v3155_v32 }
 0x165   :  { %2523 = vmatpush3.xpose.msk.msra.mxu1 %vm392_vm2, %v3149_v28  ;;  %2524 = vmatprep.mubr.msk.f32.mxu1 %vm2940_vm0, %v2941_v1 }
 0x166   :  { %2527 = vmatprep.subr.mxu1 %v2941_v1  ;;  %v2516_v61 = vpop.f32.mrb[2].mxu0 }
 0x167   :  { %v383_v62 = vpop.f32.mrb[3].mxu0  ;;  %v3199_v63 = vadd.f32 %v2516_v61, %v316_v60 }
 0x168   :  { %2525 = vmatmul.mubr.msk.f32.vlgmr.msra.gmra.mrb[4].mxu1 %vm392_vm2, %v3170_v33  ;;  %v3201_v2 = vadd.f32 %v383_v62, %v316_v60 }
 0x169   :  { %2529 = vmatprep.mubr.msk.f32.mxu1 %vm2940_vm0, %v2941_v1 }
 0x16a   :  { %2528 = vmatpush3.msra.mxu1 %v3201_v2 }
 0x16b   :  { %2532 = vmatprep.subr.mxu1 %v2941_v1 }
 0x1d2   :  { %v796_v50 = vpop.permute.xlu1 %795 }
 0x1d6   :  { %v716_v54 = vpop.permute.xlu1 %715 }
 0x237   :  { %v464_v40 = vpop.f32.mrb[2].mxu1 }
 0x238   :  { %v2521_v41 = vpop.f32.mrb[3].mxu1  ;;  %v544_v42 = vsel %vm543_vm3, %v464_v40, -inf }
 0x239   :  { %545 = vmax.xlane.f32.xlu0 %v544_v42 }
 0x23b   :  { %v539_v43 = vpop.f32.mrb[4].mxu1 }
 0x23c   :  { %v2526_v44 = vpop.f32.mrb[5].mxu1  ;;  %v547_v45 = vsel %vm543_vm3, %v539_v43, -inf }
 0x23d   :  { %548 = vmax.xlane.f32.xlu0 %v547_v45 }
 0x253   :  { %717 = vrot.lane.b32.xlu0 %v3151_v31, %s2942_s11 }
 0x2c6   :  { %v546_v46 = vpop.xlane.xlu0 %545 }
 0x2c7   :  { %v550_v47 = vsub.f32 %v464_v40, %v546_v46 }
 0x2c9   :  { %v552_v48 = vmul.f32 1.442695, %v550_v47 }
 0x2ca   :  { %v549_v49 = vpop.xlane.xlu0 %548 }
 0x2cb   :  { %2682 = vpow2.f32 %v552_v48  ;;  %v551_v51 = vsub.f32 %v539_v43, %v549_v49 }
 0x2cd   :  { %v554_v52 = vmul.f32 1.442695, %v551_v51 }
 0x2ce   :  { %v718_v53 = vpop.permute.xlu0 %717 }
 0x2cf   :  { %2684 = vpow2.f32 %v554_v52  ;;  %2538 = vmatpush3.xpose.msk.msra.mxu0 %vm392_vm2, %v718_v53  ;;  %v1057_v53 = vld [vmem:[#allocation11 + $0x8] sm:$0xff] }
 0x2d0   :  { %2547 = vmatprep.subr.mxu0 %v2941_v1 }
 0x2d2   :  { %2540 = vmatmul.mubr.msk.f32.vlgmr.msra.gmra.mrb[4].mxu0 %vm392_vm2, %v716_v54 }
 0x2d3   :  { %2549 = vmatprep.mubr.msk.f32.mxu0 %vm2940_vm0, %v2941_v1 }
 0x2d5   :  { %v2683_v55 = vpop.eup %2682 }
 0x2d6   :  { %v556_v56 = vsel %vm543_vm3, %v2683_v55, 0.0 }
 0x2d7   :  { %557 = vadd.xlane.f32.xlu1 %v556_v56 }
 0x2d9   :  { %v2685_v57 = vpop.eup %2684 }
 0x2da   :  { %v559_v58 = vsel %vm543_vm3, %v2685_v57, 0.0 }
 0x2db   :  { %560 = vadd.xlane.f32.xlu1 %v559_v58 }
 0x2ec   :  { %793 = vrot.lane.b32.xlu1 %v3170_v33, %s2942_s11 }
 0x364   :  { %v558_v3 = vpop.xlane.xlu1 %557 }
 0x365   :  { %2686 = vrcp.f32 %v558_v3 }
 0x368   :  { %v561_v4 = vpop.xlane.xlu1 %560 }
 0x369   :  { %2688 = vrcp.f32 %v561_v4 }
 0x36c   :  { %v794_v9 = vpop.permute.xlu1 %793 }
 0x36f   :  { %v2687_v5 = vpop.eup %2686 }
 0x370   :  { %v564_v6 = vmul.f32 %v2687_v5, %v2683_v55 }
 0x372   :  { %566 = vst.msk [vmem:[#allocation15] sm:$0xf] %vm543_vm3, %v564_v6  ;;  %2530 = vmatmul.mubr.msk.f32.vlgmr.msra.gmra.mrb[6].mxu1 %vm392_vm2, %v564_v6 }
 0x373   :  { %v2689_v7 = vpop.eup %2688  ;;  %2533 = vmatpush3.msra.mxu1 %v3199_v63  ;;  %2534 = vmatprep.mubr.msk.f32.mxu1 %vm2940_vm0, %v2941_v1 }
 0x374   :  { %v565_v8 = vmul.f32 %v2689_v7, %v2685_v57  ;;  %2542 = vmatprep.subr.mxu1 %v2941_v1 }
 0x376   :  { %567 = vst.msk [vmem:[#allocation15 + $0x4] sm:$0xf] %vm543_vm3, %v565_v8  ;;  %2535 = vmatmul.mubr.msk.f32.vlgmr.msra.gmra.mrb[8].mxu1 %vm392_vm2, %v565_v8 }
 0x377   :  { %2544 = vmatprep.mubr.msk.f32.mxu1 %vm2940_vm0, %v2941_v1 }
 0x37a   :  { %2543 = vmatpush3.xpose.msk.msra.mxu1 %vm392_vm2, %v796_v50  ;;  %v714_v50 = vld [vmem:[#allocation11] sm:$0xff] }
 0x37b   :  { %2552 = vmatprep.subr.mxu1 %v2941_v1 }
 0x37d   :  { %2545 = vmatmul.mubr.msk.f32.vlgmr.msra.gmra.mrb[10].mxu1 %vm392_vm2, %v794_v9 }
 0x37e   :  { %2554 = vmatprep.mubr.msk.f32.mxu1 %vm2940_vm0, %v2941_v1 }
 0x3a5   :  { %v789_v10 = vpop.f32.mrb[4].mxu0 }
 0x3a6   :  { %v2541_v11 = vpop.f32.mrb[5].mxu0  ;;  %v871_v12 = vsel %vm543_vm3, %v789_v10, -inf }
 0x3a7   :  { %872 = vmax.xlane.f32.xlu0 %v871_v12 }
 0x434   :  { %v873_v13 = vpop.xlane.xlu0 %872 }
 0x435   :  { %v877_v14 = vsub.f32 %v789_v10, %v873_v13 }
 0x437   :  { %v879_v17 = vmul.f32 1.442695, %v877_v14 }
 0x439   :  { %2690 = vpow2.f32 %v879_v17 }
 0x443   :  { %v2691_v18 = vpop.eup %2690 }
 0x444   :  { %v883_v19 = vsel %vm543_vm3, %v2691_v18, 0.0 }
 0x445   :  { %884 = vadd.xlane.f32.xlu0 %v883_v19  ;;  %v637_v24 = vpop.f32.mrb[6].mxu1 }
 0x446   :  { %v2531_v25 = vpop.f32.mrb[7].mxu1 }
 0x449   :  { %v710_v26 = vpop.f32.mrb[8].mxu1 }
 0x44a   :  { %v1135_v27 = vcombine.low %v637_v24, %v710_v26  ;;  %v2536_v29 = vpop.f32.mrb[9].mxu1 }
 0x450   :  { %v867_v30 = vpop.f32.mrb[10].mxu1 }
 0x451   :  { %v2546_v34 = vpop.f32.mrb[11].mxu1  ;;  %v874_v35 = vsel %vm543_vm3, %v867_v30, -inf }
 0x452   :  { %875 = vmax.xlane.f32.xlu1 %v874_v35 }
 0x463   :  { %981 = vrot.lane.b32.xlu1 %v3199_v63, %s2942_s11 }
 0x467   :  { %1210 = vrot.lane.b32.xlu1 %v3151_v31, %s2943_s12 }
 0x46b   :  { %1288 = vrot.lane.b32.xlu1 %v3149_v28, %s2943_s12 }
 0x46f   :  { %1286 = vrot.lane.b32.xlu1 %v3170_v33, %s2943_s12 }
 0x4d2   :  { %v885_v42 = vpop.xlane.xlu0 %884 }
 0x4df   :  { %v876_v36 = vpop.xlane.xlu1 %875 }
 0x4e0   :  { %v878_v37 = vsub.f32 %v867_v30, %v876_v36 }
 0x4e2   :  { %v881_v38 = vmul.f32 1.442695, %v878_v37 }
 0x4e3   :  { %v982_v39 = vpop.permute.xlu1 %981 }
 0x4e4   :  { %2692 = vpow2.f32 %v881_v38  ;;  %2553 = vmatpush3.msra.mxu1 %v982_v39 }
 0x4e5   :  { %2562 = vmatprep.subr.mxu1 %v2941_v1  ;;  %2694 = vrcp.f32 %v885_v42 }
 0x4e7   :  { %v1211_v48 = vpop.permute.xlu1 %1210 }
 0x4eb   :  { %v1289_v51 = vpop.permute.xlu1 %1288 }
 0x4ee   :  { %v2693_v40 = vpop.eup %2692 }
 0x4ef   :  { %v886_v41 = vsel %vm543_vm3, %v2693_v40, 0.0  ;;  %v2695_v44 = vpop.eup %2694  ;;  %v1287_v52 = vpop.permute.xlu1 %1286 }
 0x4f0   :  { %887 = vadd.xlane.f32.xlu0 %v886_v41  ;;  %v3237_v45 = vmul.f32 %v2695_v44, %v2691_v18 }
 0x506   :  { %905 = vrot.lane.b32.xlu0 %v3201_v2, %s2942_s11 }
 0x50a   :  { %1208 = vrot.lane.b32.xlu0 %v3155_v32, %s2943_s12 }
 0x57d   :  { %v888_v43 = vpop.xlane.xlu0 %887 }
 0x57e   :  { %2696 = vrcp.f32 %v888_v43 }
 0x581   :  { %v906_v46 = vpop.permute.xlu0 %905 }
 0x582   :  { %2548 = vmatpush3.msra.mxu0 %v906_v46 }
 0x583   :  { %2550 = vmatmul.mubr.msk.f32.vlgmr.msra.gmra.mrb[6].mxu0 %vm392_vm2, %v3237_v45  ;;  %2557 = vmatprep.subr.mxu0 %v2941_v1 }
 0x584   :  { %2559 = vmatprep.mubr.msk.f32.mxu0 %vm2940_vm0, %v2941_v1  ;;  %2558 = vmatpush3.msra.mxu0 %v1057_v53 }
 0x585   :  { %2567 = vmatprep.subr.mxu0 %v2941_v1  ;;  %v1209_v62 = vpop.permute.xlu0 %1208 }
 0x588   :  { %v2697_v47 = vpop.eup %2696 }
 0x589   :  { %v3244_v49 = vmul.f32 %v2697_v47, %v2693_v40  ;;  %v1548_v40 = vld [vmem:[#allocation11 + $0x10] sm:$0xff] }
 0x58b   :  { %2555 = vmatmul.mubr.msk.f32.vlgmr.msra.gmra.mrb[12].mxu1 %vm392_vm2, %v3244_v49 }
 0x58c   :  { %2563 = vmatpush3.msra.mxu1 %v714_v50  ;;  %2564 = vmatprep.mubr.msk.f32.mxu1 %vm2940_vm0, %v2941_v1 }
 0x58d   :  { %2572 = vmatprep.subr.mxu1 %v2941_v1 }
 0x58f   :  { %2565 = vmatmul.mubr.msk.f32.vlgmr.msra.gmra.mrb[14].mxu1 %vm392_vm2, %v1135_v27 }
 0x590   :  { %2574 = vmatprep.mubr.msk.f32.mxu1 %vm2940_vm0, %v2941_v1 }
 0x593   :  { %2573 = vmatpush3.xpose.msk.msra.mxu1 %vm392_vm2, %v1289_v51 }
 0x594   :  { %2582 = vmatprep.subr.mxu1 %v2941_v1 }
 0x596   :  { %2575 = vmatmul.mubr.msk.f32.vlgmr.msra.gmra.mrb[16].mxu1 %vm392_vm2, %v1287_v52 }
 0x597   :  { %2584 = vmatprep.mubr.msk.f32.mxu1 %vm2940_vm0, %v2941_v1 }
 0x656   :  { %v976_v54 = vpop.f32.mrb[6].mxu0 }
 0x657   :  { %v2551_v55 = vpop.f32.mrb[7].mxu0 }
 0x65e   :  { %v1052_v56 = vpop.f32.mrb[12].mxu1 }
 0x65f   :  { %v1060_v57 = vcombine.low %v976_v54, %v1052_v56  ;;  %v2556_v58 = vpop.f32.mrb[13].mxu1 }
 0x661   :  { %2560 = vmatmul.mubr.msk.f32.vlgmr.msra.gmra.mrb[8].mxu0 %vm392_vm2, %v1060_v57 }
 0x662   :  { %2568 = vmatpush3.xpose.msk.msra.mxu0 %vm392_vm2, %v1211_v48  ;;  %v1204_v60 = vpop.f32.mrb[14].mxu1  ;;  %2569 = vmatprep.mubr.msk.f32.mxu0 %vm2940_vm0, %v2941_v1 }
 0x663   :  { %v2566_v61 = vpop.f32.mrb[15].mxu1  ;;  %2577 = vmatprep.subr.mxu0 %v2941_v1 }
 0x665   :  { %2570 = vmatmul.mubr.msk.f32.vlgmr.msra.gmra.mrb[10].mxu0 %vm392_vm2, %v1209_v62 }
 0x666   :  { %2579 = vmatprep.mubr.msk.f32.mxu0 %vm2940_vm0, %v2941_v1 }
 0x669   :  { %v1360_v3 = vpop.f32.mrb[16].mxu1 }
 0x66a   :  { %v2576_v4 = vpop.f32.mrb[17].mxu1  ;;  %v1367_v5 = vsel %vm543_vm3, %v1360_v3, -inf }
 0x66b   :  { %1368 = vmax.xlane.f32.xlu1 %v1367_v5 }
 0x67c   :  { %1472 = vrot.lane.b32.xlu1 %v3199_v63, %s2943_s12 }
 0x680   :  { %1627 = vrot.lane.b32.xlu1 %v3151_v31, %s2944_s13 }
 0x684   :  { %1705 = vrot.lane.b32.xlu1 %v3149_v28, %s2944_s13 }
 0x688   :  { %1703 = vrot.lane.b32.xlu1 %v3170_v33, %s2944_s13 }
 0x6f8   :  { %v1369_v6 = vpop.xlane.xlu1 %1368 }
 0x6f9   :  { %v1371_v8 = vsub.f32 %v1360_v3, %v1369_v6 }
 0x6fb   :  { %v1374_v9 = vmul.f32 1.442695, %v1371_v8 }
 0x6fc   :  { %v1473_v7 = vpop.permute.xlu1 %1472 }
 0x6fd   :  { %2583 = vmatpush3.msra.mxu1 %v1473_v7  ;;  %2698 = vpow2.f32 %v1374_v9 }
 0x6fe   :  { %2592 = vmatprep.subr.mxu1 %v2941_v1 }
 0x700   :  { %v1628_v30 = vpop.permute.xlu1 %1627 }
 0x704   :  { %v1706_v44 = vpop.permute.xlu1 %1705 }
 0x707   :  { %v2699_v28 = vpop.eup %2698 }
 0x708   :  { %v1379_v33 = vsel %vm543_vm3, %v2699_v28, 0.0  ;;  %v1704_v50 = vpop.permute.xlu1 %1703 }
 0x734   :  { %v1129_v10 = vpop.f32.mrb[8].mxu0 }
 0x735   :  { %v3278_v11 = vadd.f32 %v1204_v60, %v1129_v10  ;;  %v2561_v12 = vpop.f32.mrb[9].mxu0 }
 0x738   :  { %v1282_v13 = vpop.f32.mrb[10].mxu0 }
 0x739   :  { %v2571_v31 = vpop.f32.mrb[11].mxu0  ;;  %v1364_v14 = vsel %vm543_vm3, %v1282_v13, -inf }
 0x73a   :  { %1365 = vmax.xlane.f32.xlu0 %v1364_v14 }
 0x73e   :  { %1380 = vadd.xlane.f32.xlu0 %v1379_v33 }
 0x7c7   :  { %v1366_v17 = vpop.xlane.xlu0 %1365 }
 0x7c8   :  { %v1370_v18 = vsub.f32 %v1282_v13, %v1366_v17 }
 0x7ca   :  { %v1372_v19 = vmul.f32 1.442695, %v1370_v18 }
 0x7cb   :  { %v1381_v24 = vpop.xlane.xlu0 %1380 }
 0x7cc   :  { %2700 = vpow2.f32 %v1372_v19  ;;  %v3339_v19 = vsub.s32 3, %v3132_v20 }
 0x7cd   :  { %2702 = vrcp.f32 %v1381_v24 }
 0x7ce   :  { %v2045_v24 = vrot.slane %v3140_v22, %v3339_v19 }
 0x7d6   :  { %v2701_v25 = vpop.eup %2700 }
 0x7d7   :  { %v2703_v26 = vpop.eup %2702  ;;  %v1376_v27 = vsel %vm543_vm3, %v2701_v25, 0.0 }
 0x7d8   :  { %v3283_v29 = vmul.f32 %v2703_v26, %v2699_v28  ;;  %1377 = vadd.xlane.f32.xlu0 %v1376_v27 }
 0x7da   :  { %2585 = vmatmul.mubr.msk.f32.vlgmr.msra.gmra.mrb[18].mxu1 %vm392_vm2, %v3283_v29 }
 0x7db   :  { %2593 = vmatpush3.xpose.msk.msra.mxu1 %vm392_vm2, %v1628_v30  ;;  %2594 = vmatprep.mubr.msk.f32.mxu1 %vm2940_vm0, %v2941_v1 }
 0x7dc   :  { %2602 = vmatprep.subr.mxu1 %v2941_v1 }
 0x7ee   :  { %1397 = vrot.lane.b32.xlu0 %v3201_v2, %s2943_s12 }
 0x7f2   :  { %1625 = vrot.lane.b32.xlu0 %v3155_v32, %s2944_s13 }
 0x865   :  { %v1378_v34 = vpop.xlane.xlu0 %1377 }
 0x866   :  { %2704 = vrcp.f32 %v1378_v34 }
 0x869   :  { %v1398_v35 = vpop.permute.xlu0 %1397 }
 0x86a   :  { %2578 = vmatpush3.msra.mxu0 %v1398_v35 }
 0x86b   :  { %2587 = vmatprep.subr.mxu0 %v2941_v1 }
 0x86d   :  { %v1626_v36 = vpop.permute.xlu0 %1625 }
 0x86e   :  { %2595 = vmatmul.mubr.msk.f32.vlgmr.msra.gmra.mrb[20].mxu1 %vm392_vm2, %v1626_v36 }
 0x86f   :  { %2604 = vmatprep.mubr.msk.f32.mxu1 %vm2940_vm0, %v2941_v1 }
 0x870   :  { %v2705_v37 = vpop.eup %2704 }
 0x871   :  { %v3299_v38 = vmul.f32 %v2705_v37, %v2701_v25 }
 0x873   :  { %2580 = vmatmul.mubr.msk.f32.vlgmr.msra.gmra.mrb[12].mxu0 %vm392_vm2, %v3299_v38 }
 0x874   :  { %2589 = vmatprep.mubr.msk.f32.mxu0 %vm2940_vm0, %v2941_v1  ;;  %2588 = vmatpush3.msra.mxu0 %v1548_v40  ;;  %v2946_v40 = vmov 1985246804  }
 0x875   :  { %2597 = vmatprep.subr.mxu0 %v2941_v1 }
 0x8ad   :  { %v1543_v32 = vpop.f32.mrb[18].mxu1 }
 0x8ae   :  { %v2586_v39 = vpop.f32.mrb[19].mxu1 }
 0x941   :  { %v1699_v41 = vpop.f32.mrb[20].mxu1 }
 0x942   :  { %v2596_v42 = vpop.f32.mrb[21].mxu1  ;;  %v1781_v43 = vsel %vm543_vm3, %v1699_v41, -inf }
 0x943   :  { %1782 = vmax.xlane.f32.xlu0 %v1781_v43 }
 0x946   :  { %v1468_v46 = vpop.f32.mrb[12].mxu0 }
 0x947   :  { %v1551_v47 = vcombine.low %v1468_v46, %v1543_v32  ;;  %v2581_v48 = vpop.f32.mrb[13].mxu0  ;;  %v2945_v32 = vmov 839922192  }
 0x948   :  { %v2063_v39 = vunpack.c.l.s4 %v2945_v32 }
 0x949   :  { %2590 = vmatmul.mubr.msk.f32.vlgmr.msra.gmra.mrb[14].mxu0 %vm392_vm2, %v1551_v47 }
 0x94a   :  { %2598 = vmatpush3.xpose.msk.msra.mxu0 %vm392_vm2, %v1706_v44  ;;  %2599 = vmatprep.mubr.msk.f32.mxu0 %vm2940_vm0, %v2941_v1  ;;  %v2064_v42 = vunpack.c.0.s8 %v2063_v39 }
 0x94b   :  { %2607 = vmatprep.subr.mxu0 %v2941_v1 }
 0x94c   :  { %v3347_v44 = vsub.s32 %v2064_v42, %v3132_v20 }
 0x94d   :  { %2600 = vmatmul.mubr.msk.f32.vlgmr.msra.gmra.mrb[16].mxu0 %vm392_vm2, %v1704_v50 }
 0x94e   :  { %2609 = vmatprep.mubr.msk.f32.mxu0 %vm2940_vm0, %v2941_v1 }
 0x9d0   :  { %v1783_v51 = vpop.xlane.xlu0 %1782 }
 0x9d1   :  { %v1787_v52 = vsub.f32 %v1699_v41, %v1783_v51  ;;  %v2070_v41 = vunpack.c.l.s4 %v2946_v40 }
 0x9d3   :  { %v1789_v53 = vmul.f32 1.442695, %v1787_v52  ;;  %v2071_v43 = vunpack.c.0.s8 %v2070_v41 }
 0x9d5   :  { %2706 = vpow2.f32 %v1789_v53  ;;  %v3350_v46 = vsub.s32 %v2071_v43, %v3132_v20 }
 0x9df   :  { %v2707_v54 = vpop.eup %2706 }
 0x9e0   :  { %v1793_v55 = vsel %vm543_vm3, %v2707_v54, 0.0 }
 0x9e1   :  { %1794 = vadd.xlane.f32.xlu0 %v1793_v55 }
 0xa1c   :  { %v1620_v56 = vpop.f32.mrb[14].mxu0 }
 0xa1d   :  { %v1624_v57 = vadd.f32 %v1620_v56, %v3278_v11  ;;  %v2591_v58 = vpop.f32.mrb[15].mxu0  ;;  %v2129_v56 = vld [vmem:[#allocation13] sm:$0xff] }
 0xa1e   :  { %v2131_v58 = vld [vmem:[#allocation13 + $0x10] sm:$0xff] }
 0xa20   :  { %v1777_v60 = vpop.f32.mrb[16].mxu0 }
 0xa21   :  { %v2601_v61 = vpop.f32.mrb[17].mxu0  ;;  %v1784_v62 = vsel %vm543_vm3, %v1777_v60, -inf }
 0xa22   :  { %1785 = vmax.xlane.f32.xlu1 %v1784_v62  ;;  %v2132_v61 = vld [vmem:[#allocation13 + $0x18] sm:$0xff] }
 0xa23   :  { %v2654_v62 = vpack.c.bf16 %v2132_v61, %v2131_v58 }
 0xa33   :  { %1889 = vrot.lane.b32.xlu1 %v3199_v63, %s2944_s13 }
 0xa6e   :  { %v1795_v9 = vpop.xlane.xlu0 %1794 }
 0xaaf   :  { %v1786_v3 = vpop.xlane.xlu1 %1785 }
 0xab0   :  { %v1788_v4 = vsub.f32 %v1777_v60, %v1786_v3 }
 0xab2   :  { %v1791_v5 = vmul.f32 1.442695, %v1788_v4 }
 0xab3   :  { %v1890_v6 = vpop.permute.xlu1 %1889 }
 0xab4   :  { %2708 = vpow2.f32 %v1791_v5  ;;  %2608 = vmatpush3.msra.mxu0 %v1890_v6  ;;  %v2113_v6 = vsub.s32 5, %v3132_v20 }
 0xab5   :  { %2650 = vmatprep.subr.bf16.mxu0 %v2939_v0  ;;  %2710 = vrcp.f32 %v1795_v9 }
 0xabe   :  { %v2709_v7 = vpop.eup %2708 }
 0xabf   :  { %v1796_v8 = vsel %vm543_vm3, %v2709_v7, 0.0  ;;  %v2711_v11 = vpop.eup %2710 }
 0xac0   :  { %1797 = vadd.xlane.f32.xlu0 %v1796_v8  ;;  %v3324_v63 = vmul.f32 %v2711_v11, %v2707_v54  ;;  %v2114_v8 = vrot.slane %v3140_v22, %v2113_v6 }
 0xad6   :  { %1814 = vrot.lane.b32.xlu0 %v3201_v2, %s2944_s13  ;;  %v1965_v2 = vld [vmem:[#allocation11 + $0x18] sm:$0xff] }
 0xb4d   :  { %v1798_v10 = vpop.xlane.xlu0 %1797 }
 0xb4e   :  { %2712 = vrcp.f32 %v1798_v10 }
 0xb51   :  { %v1815_v12 = vpop.permute.xlu0 %1814 }
 0xb52   :  { %2603 = vmatpush3.msra.mxu1 %v1815_v12 }
 0xb53   :  { %2605 = vmatmul.mubr.msk.f32.vlgmr.msra.gmra.mrb[22].mxu1 %vm392_vm2, %v3324_v63  ;;  %2612 = vmatprep.subr.mxu1 %v2941_v1 }
 0xb54   :  { %2614 = vmatprep.mubr.msk.f32.mxu1 %vm2940_vm0, %v2941_v1  ;;  %2613 = vmatpush3.msra.mxu1 %v1965_v2 }
 0xb58   :  { %v2713_v13 = vpop.eup %2712 }
 0xb59   :  { %v3331_v31 = vmul.f32 %v2713_v13, %v2709_v7  ;;  %v2122_v7 = vsub.s32 6, %v3132_v20  ;;  %v2116_v13 = vcombine.high %v2114_v8, %v2114_v8 }
 0xb5b   :  { %2610 = vmatmul.mubr.msk.f32.vlgmr.msra.gmra.mrb[18].mxu0 %vm392_vm2, %v3331_v31  ;;  %v2123_v9 = vrot.slane %v3140_v22, %v2122_v7 }
 0xb5c   :  { %2625 = vmatprep.mubr.msk.f32.mxu0 %vm2940_vm0, %v2941_v1 }
 0xc26   :  { %v1885_v14 = vpop.f32.mrb[22].mxu1 }
 0xc27   :  { %v2606_v28 = vpop.f32.mrb[23].mxu1 }
 0xc2e   :  { %v1960_v33 = vpop.f32.mrb[18].mxu0 }
 0xc2f   :  { %v1968_v17 = vcombine.low %v1885_v14, %v1960_v33  ;;  %v2611_v18 = vpop.f32.mrb[19].mxu0  ;;  %v2125_v14 = vcombine.high %v2123_v9, %v2123_v9 }
 0xc31   :  { %2615 = vmatmul.mubr.msk.f32.vlgmr.msra.gmra.mrb[24].mxu1 %vm392_vm2, %v1968_v17 }
 0xd04   :  { %v2037_v25 = vpop.f32.mrb[24].mxu1 }
 0xd05   :  { %v2041_v26 = vadd.f32 %v2037_v25, %v1624_v57  ;;  %v2616_v27 = vpop.f32.mrb[25].mxu1  ;;  %v2130_v57 = vld [vmem:[#allocation13 + $0x8] sm:$0xff]  ;;  %v2135_v25 = vsub.s32 4, %v3132_v20 }
 0xd06   :  { %v2651_v60 = vpack.c.bf16 %v2130_v57, %v2129_v56  ;;  %v2278_v56 = vsub.s32 7, %v3132_v20 }
 0xd07   :  { %v2046_v30 = vadd.f32 %v2045_v24, %v2041_v26  ;;  %v2136_v26 = vrot.slane %v3140_v22, %v2135_v25 }
 0xd08   :  { %2652 = vmatpush3.bf16.msra.mxu0 %v2651_v60 }
 0xd09   :  { %v2048_v1 = vcombine.high %v2046_v30, %v2046_v30  ;;  %v2050_v34 = vadd.f32 %v2046_v30, %v3119_v15  ;;  %2653 = vmatprep.subr.bf16.mxu0 %v2939_v0 }
 0xd0b   :  { %v2051_v35 = vadd.f32 %v2048_v1, %v3121_v16 }
 0xd0c   :  { %2655 = vmatpush3.bf16.msra.mxu0 %v2654_v62 }
 0xd0d   :  { %v2054_v36 = vcombine.low %v2050_v34, %v2051_v35 }
 0xd0f   :  { %v2056_v37 = vsel %vm145_vm1, %v2054_v36, 0.0 }
 0xd10   :  { %2057 = vadd.xlane.f32.xlu1 %v2056_v37 }
 0xd9d   :  { %v2058_v47 = vpop.xlane.xlu1 %2057 }
 0xd9e   :  { %v2060_v15 = vmul.f32 0.03125, %v2058_v47 }
 0xda0   :  { %v2068_v16 = vrot.slane %v2060_v15, %v3347_v44  ;;  %v2075_v48 = vrot.slane %v2060_v15, %v3350_v46 }
 0xda2   :  { %v2078_v50 = vsub.f32 %v2050_v34, %v2068_v16  ;;  %v2079_v51 = vsub.f32 %v2051_v35, %v2075_v48 }
 0xda4   :  { %v2080_v52 = vmul.f32 %v2078_v50, %v2078_v50  ;;  %v2081_v53 = vmul.f32 %v2079_v51, %v2079_v51 }
 0xda6   :  { %v2084_v54 = vcombine.low %v2080_v52, %v2081_v53 }
 0xda8   :  { %v2086_v55 = vsel %vm145_vm1, %v2084_v54, 0.0 }
 0xda9   :  { %2087 = vadd.xlane.f32.xlu0 %v2086_v55 }
 0xe36   :  { %v2088_v3 = vpop.xlane.xlu0 %2087 }
 0xe37   :  { %v2089_v4 = vmul.f32 0.03125, %v2088_v3 }
 0xe39   :  { %v2090_v5 = vadd.f32 1e-05, %v2089_v4 }
 0xe3b   :  { %2714 = vrsqrt.f32 %v2090_v5 }
 0xe45   :  { %v2715_v10 = vpop.eup %2714 }
 0xe46   :  { %v2099_v11 = vrot.slane %v2715_v10, %v3347_v44  ;;  %v2106_v12 = vrot.slane %v2715_v10, %v3350_v46 }
 0xe48   :  { %v2109_v0 = vmul.f32 %v2099_v11, %v2078_v50  ;;  %v2110_v2 = vmul.f32 %v2106_v12, %v2079_v51 }
 0xe4a   :  { %v2118_v28 = vmul.f32 %v2114_v8, %v2109_v0  ;;  %v2119_v33 = vmul.f32 %v2116_v13, %v2110_v2 }
 0xe4c   :  { %v2127_v17 = vadd.f32 %v2123_v9, %v2118_v28  ;;  %v2128_v18 = vadd.f32 %v2125_v14, %v2119_v33 }
 0xe4e   :  { %v2139_v24 = vcombine.low %v2127_v17, %v2128_v18 }
 0xe50   :  { %2626 = vmatmul.mubr.msk.f32.vlgmr.msra.gmra.mrb[20].mxu0 %vm145_vm1, %v2139_v24 }
 0xf23   :  { %v2208_v27 = vpop.f32.mrb[20].mxu0 }
 0xf24   :  { %v2209_v30 = vadd.f32 %v2208_v27, %v2136_v26  ;;  %v2627_v1 = vpop.f32.mrb[21].mxu0 }
 0xf26   :  { %v2212_v34 = vmax.f32 %v2209_v30, 0.0 }
 0xf28   :  { %v2214_v35 = vcombine.high %v2212_v34, %v2212_v34  ;;  %v2216_v36 = vadd.f32 %v2212_v34, %v2127_v17 }
 0xf2a   :  { %v2217_v37 = vadd.f32 %v2214_v35, %v2128_v18 }
 0xf2c   :  { %v2220_v32 = vcombine.low %v2216_v36, %v2217_v37 }
 0xf2e   :  { %v2222_v39 = vsel %vm145_vm1, %v2220_v32, 0.0 }
 0xf2f   :  { %2223 = vadd.xlane.f32.xlu0 %v2222_v39 }
 0xf45   :  { %895 = vrot.lane.b32.xlu0 %v3237_v45, %s2930_s20 }
 0xf49   :  { %1390 = vrot.lane.b32.xlu0 %v3283_v29, %s2947_s1 }
 0xf4d   :  { %1805 = vrot.lane.b32.xlu0 %v3324_v63, %s2948_s10 }
 0xfbc   :  { %v2224_v40 = vpop.xlane.xlu0 %2223 }
 0xfbd   :  { %v2225_v41 = vmul.f32 0.03125, %v2224_v40 }
 0xfbf   :  { %v2233_v42 = vrot.slane %v2225_v41, %v3347_v44  ;;  %v2240_v43 = vrot.slane %v2225_v41, %v3350_v46 }
 0xfc0   :  { %v896_v47 = vpop.permute.xlu0 %895 }
 0xfc1   :  { %v2243_v15 = vsub.f32 %v2216_v36, %v2233_v42  ;;  %v2244_v16 = vsub.f32 %v2217_v37, %v2240_v43  ;;  %902 = vst.msk [vmem:[#allocation15] sm:$0xf] %vm901_vm4, %v896_v47 }
 0xfc3   :  { %v2245_v45 = vmul.f32 %v2243_v15, %v2243_v15  ;;  %v2246_v48 = vmul.f32 %v2244_v16, %v2244_v16 }
 0xfc4   :  { %v1391_v52 = vpop.permute.xlu0 %1390 }
 0xfc5   :  { %v2249_v50 = vcombine.low %v2245_v45, %v2246_v48 }
 0xfc7   :  { %v2251_v29 = vsel %vm145_vm1, %v2249_v50, 0.0 }
 0xfc8   :  { %2252 = vadd.xlane.f32.xlu1 %v2251_v29  ;;  %v1806_v57 = vpop.permute.xlu0 %1805 }
 0xfd9   :  { %897 = vrot.lane.b32.xlu1 %v3244_v49, %s2930_s20  ;;  %v133_v49 = vld [vmem:[%s3442_s7 + $0x8] sm:$0xff]  ;;  %s2949_s7 = smov 96  }
 0xfda   :  { %v2288_v58 = vrot.slane %v133_v49, %v3143_v23 }
 0xfdc   :  { %v2290_v5 = vcombine.high %v2288_v58, %v2288_v58 }
 0xfdd   :  { %1388 = vrot.lane.b32.xlu1 %v3299_v38, %s2947_s1  ;;  %v2279_v38 = vrot.slane %v3140_v22, %v2278_v56 }
 0xfdf   :  { %v2281_v3 = vcombine.high %v2279_v38, %v2279_v38 }
0x1055   :  { %v2253_v63 = vpop.xlane.xlu1 %2252 }
0x1056   :  { %v2254_v51 = vmul.f32 0.03125, %v2253_v63 }
0x1058   :  { %v2255_v53 = vadd.f32 1e-05, %v2254_v51 }
0x1059   :  { %v898_v54 = vpop.permute.xlu1 %897 }
0x105a   :  { %2716 = vrsqrt.f32 %v2255_v53  ;;  %903 = vst.msk [vmem:[#allocation15 + $0x4] sm:$0xf] %vm901_vm4, %v898_v54 }
0x105b   :  { %1396 = vst.msk [vmem:[#allocation15 + $0x4] sm:$0xf] %vm1394_vm5, %v1391_v52 }
0x105d   :  { %v1389_v55 = vpop.permute.xlu1 %1388 }
0x105e   :  { %1395 = vst.msk [vmem:[#allocation15] sm:$0xf] %vm1394_vm5, %v1389_v55 }
0x105f   :  { %1812 = vst.msk [vmem:[#allocation15] sm:$0xf] %vm1811_vm6, %v1806_v57 }
0x1064   :  { %v2717_v60 = vpop.eup %2716 }
0x1065   :  { %v2264_v61 = vrot.slane %v2717_v60, %v3347_v44  ;;  %v2271_v62 = vrot.slane %v2717_v60, %v3350_v46 }
0x1067   :  { %v2274_v4 = vmul.f32 %v2264_v61, %v2243_v15  ;;  %v2275_v20 = vmul.f32 %v2271_v62, %v2244_v16 }
0x1069   :  { %v2283_v6 = vmul.f32 %v2279_v38, %v2274_v4  ;;  %v2284_v7 = vmul.f32 %v2281_v3, %v2275_v20 }
0x106b   :  { %v2292_v8 = vadd.f32 %v2288_v58, %v2283_v6  ;;  %v2293_v9 = vadd.f32 %v2290_v5, %v2284_v7 }
0x106d   :  { %v2342_v22 = vrot.slane %v2292_v8, %v3339_v19  ;;  %v2346_v10 = vrot.slane %v2293_v9, %v3339_v19  ;;  %v2312_v11 = vrot.slane %v2292_v8, %v3135_v21  ;;  %v2316_v44 = vrot.slane %v2293_v9, %v3135_v21 }
0x106e   :  { %v2299_v46 = vrot.slane %v2292_v8, %v3143_v23  ;;  %v2303_v12 = vrot.slane %v2293_v9, %v3143_v23  ;;  %v2327_v2 = vrot.slane %v2292_v8, %v3193_v59  ;;  %v2331_v14 = vrot.slane %v2293_v9, %v3193_v59 }
0x106f   :  { %v2348_v13 = vsel %vm2347_vm7, %v2346_v10, %v2342_v22  ;;  %v2318_v0 = vsel %vm2317_vm8, %v2316_v44, %v2312_v11 }
0x1070   :  { %2349 = vrot.lane.b32.xlu0 %v2348_v13, %s2949_s7  ;;  %2319 = vrot.lane.b32.xlu1 %v2318_v0, %s2950_s15  ;;  %v2305_v19 = vsel %vm2304_vm9, %v2303_v12, %v2299_v46  ;;  %v2333_v21 = vsel %vm2332_vm11, %v2331_v14, %v2327_v2 }
0x1071   :  { %2308 = vst.msk [vmem:[#allocation14] sm:$0x3] %vm2307_vm10, %v2305_v19 }
0x1074   :  { %2334 = vrot.lane.b32.xlu1 %v2333_v21, %s2934_s5 }
0x1078   :  { %1807 = vrot.lane.b32.xlu1 %v3331_v31, %s2948_s10 }
0x10e2   :  { %v2320_v23 = vpop.permute.xlu1 %2319  ;;  %v2350_v28 = vpop.permute.xlu0 %2349 }
0x10e3   :  { %2323 = vst.msk [vmem:[#allocation14 - $0x1] sm:$0x6] %vm2322_vm12, %v2320_v23 }
0x10e6   :  { %v2335_v59 = vpop.permute.xlu1 %2334 }
0x10e7   :  { %2338 = vst.msk [vmem:[#allocation14 - $0x2] sm:$0xc] %vm2337_vm13, %v2335_v59 }
0x10e8   :  { %2353 = vst.msk [vmem:[#allocation14 - $0x3] sm:$0x18] %vm2352_vm14, %v2350_v28 }
0x10e9   :  { %2883 = shalt.err (!%p2880_p4)
}
0x10ea   :  { %s2884_s3 = scalar_lea.hbm %s3443_s8, 32 }
0x10eb   :  { %p2885_p5 = scmp.ne.s32.totalorder %s3443_s8, %s2884_s3  ;;  %p2888_p6 = scmp.lt.u32.totalorder %s2884_s3, %s3443_s8 }
0x10ed   :  { %p2890_p7 = pnand %p2888_p6, %p2885_p5 }
0x10ef   :  { %2893 = shalt.err (!%p2890_p7)
}
0x10f0   :  { %2363 = dma.vmem_to_hbm [thread:$0]  %s2361_s17, 32, %s3443_s8, [#allocation4]   ;;  %v1808_v31 = vpop.permute.xlu1 %1807 }
0x10f1   :  { %1813 = vst.msk [vmem:[#allocation15 + $0x4] sm:$0xf] %vm1811_vm6, %v1808_v31  ;;  %s2894_s4 = scalar_lea.vmem %s3400_s18, 128  ;;  %p2899_p9 = scmp.lt.s32.totalorder %s3400_s18, %s3400_s18 }
0x10f2   :  { %p2895_p8 = scmp.ne.s32.totalorder %s3400_s18, %s2894_s4  ;;  %p2900_p10 = scmp.lt.s32.totalorder %s2894_s4, %s2894_s4 }
0x10f4   :  { %p2901_p11 = por %p2900_p10, %p2899_p9 }
0x10f6   :  { %p2902_p12 = pnand %p2901_p11, %p2895_p8 }
0x10f8   :  { %2905 = shalt.err (!%p2902_p12)
}
0x10f9   :  { %s2906_s19 = scalar_lea.hbm %s3444_s9, 128 }
0x10fa   :  { %p2907_p13 = scmp.ne.s32.totalorder %s3444_s9, %s2906_s19  ;;  %p2910_p0 = scmp.lt.u32.totalorder %s2906_s19, %s3444_s9 }
0x10fc   :  { %p2912_p1 = pnand %p2910_p0, %p2907_p13 }
0x10fe   :  { %2915 = shalt.err (!%p2912_p1)
}
0x10ff   :  { %2375 = dma.vmem_to_hbm [thread:$0]  %s3400_s18, 128, %s3444_s9, [#allocation16], %s2934_s5, %s2934_s5, %s2935_s26  }
0x1100   :  { %2924 = dma.done.wait [#allocation4], 32  }
0x1101   :  { %2925 = vsyncadd [#allocation4], 4294967264 }
0x1102   :  { %2926 = dma.done.wait [#allocation16], 128  }
0x1103   :  { %2927 = vsyncadd [#allocation16], 4294967168 }
0x1104   :  { %2382 = vsyncpa [#allocation3], 1 }
0x1105   :  { %2383 = vsyncpa [#allocation6], 1 }
0x1106   :  { %2384 = vsyncpa [#allocation9], 1 }
0x1107   :  { %2385 = vsyncpa [#allocation12], 1 }
0x1108   :  { %2386 = vsyncpa [#allocation4], 1 }
0x1109   :  { %2387 = vsyncpa [#allocation16], 1 }

</bundles_post_ra>
